<compile_context>
chip_gen: v6e
topology: v6e:2x2x1
jax: 0.10.0
libtpu: 0.0.40
codegen_flags: <defaults>
</compile_context>

<pallas_src>
import jax
import jax.numpy as jnp
from jax.experimental import pallas as pl
from jax.experimental.pallas import tpu as pltpu

_TB = 8  # batch rows per grid step (sublane-aligned output blocks)


def _make_kernel(dims, tb):
    """Builds the fused row-gather kernel for per-feature dims `dims`."""
    num_f = len(dims)
    offs = []
    off = 0
    for d in dims:
        offs.append(off)
        off += d

    def kernel(idx_ref, *refs):
        table_refs = refs[:num_f]                   # HBM refs, (V_f, D_f)
        out_ref = refs[num_f]                       # VMEM block, (tb, sum(D_f))
        slabs = refs[num_f + 1: 2 * num_f + 1]      # VMEM buffers, (tb, D_f)
        sem = refs[2 * num_f + 1]                   # shared DMA semaphore

        base = pl.program_id(0) * (tb * num_f)

        # Issue every row-gather DMA for this batch tile up front so all
        # tb*num_f copies are in flight concurrently (indices come from the
        # SMEM-prefetched, flattened index array).
        copies = []
        for r in range(tb):
            for f in range(num_f):
                row = idx_ref[base + r * num_f + f]
                cp = pltpu.make_async_copy(
                    table_refs[f].at[pl.ds(row, 1)],   # (1, D_f) HBM row
                    slabs[f].at[pl.ds(r, 1)],          # (1, D_f) VMEM dst row
                    sem,
                )
                cp.start()
                copies.append(cp)
        for cp in copies:
            cp.wait()

        # Place each feature at its static column offset in the fused,
        # lane-dense output slab.
        for f in range(num_f):
            out_ref[:, offs[f]:offs[f] + dims[f]] = (
                slabs[f][...].astype(out_ref.dtype))

    return kernel


def _fused_embedding_gather(idx, tables):
    """idx: (B, F) int32, already clamped to valid rows.
    tables[f]: (V_f, D_f), all the same float dtype.
    Returns (B, sum(D_f)) with feature f's embedding at its column offset."""
    batch, num_f = idx.shape
    assert num_f == len(tables)
    dims = [int(t.shape[1]) for t in tables]
    d_total = sum(dims)
    out_dtype = tables[0].dtype
    assert all(t.dtype == out_dtype for t in tables), "tables must share dtype"

    tb = _TB
    b_pad = ((batch + tb - 1) // tb) * tb
    if b_pad != batch:
        # Pad rows gather row 0 (always valid); sliced off below.
        idx = jnp.pad(idx, ((0, b_pad - batch), (0, 0)))
    idx_flat = idx.reshape(-1)   # 1-D -> minimal SMEM padding

    grid = (b_pad // tb,)
    in_specs = [pl.BlockSpec(memory_space=pl.ANY) for _ in range(num_f)]
    out_spec = pl.BlockSpec((tb, d_total), lambda i, idx_ref: (i, 0))

    grid_spec = pltpu.PrefetchScalarGridSpec(
        num_scalar_prefetch=1,
        grid=grid,
        in_specs=in_specs,
        out_specs=out_spec,
        scratch_shapes=(
            [pltpu.VMEM((tb, d), out_dtype) for d in dims]
            + [pltpu.SemaphoreType.DMA(())]
        ),
    )

    itemsize = jnp.dtype(out_dtype).itemsize
    cost = pl.CostEstimate(
        flops=0,
        transcendentals=0,
        bytes_accessed=b_pad * num_f * 4 + 2 * b_pad * d_total * itemsize,
    )

    out = pl.pallas_call(
        _make_kernel(dims, tb),
        out_shape=jax.ShapeDtypeStruct((b_pad, d_total), out_dtype),
        grid_spec=grid_spec,
        compiler_params=pltpu.CompilerParams(
            dimension_semantics=("parallel",)),
        cost_estimate=cost,
    )(idx_flat, *tables)

    return out[:batch] if b_pad != batch else out


def one_hot_embedding_forward(x, tables, cat_emb=False):
    """Forward of OneHotEmbeddingLayer.

    x: (batch, num_features) integer indices; tables[f]: (V_f, D_f) float.
    cat_emb=False -> (batch, num_features, D)   (torch.stack, needs equal D_f)
    cat_emb=True  -> (batch, sum(D_f))          (torch.cat)
    """
    batch, num_f = x.shape
    assert num_f == len(tables)
    dims = [int(t.shape[1]) for t in tables]

    # TODO(synk): torch nn.Embedding raises on out-of-range indices; here we
    # clamp instead (an OOB gather DMA would otherwise be unchecked).
    max_row = jnp.asarray([t.shape[0] - 1 for t in tables], dtype=jnp.int32)
    idx = jnp.clip(x.astype(jnp.int32), 0, max_row[None, :])

    out = _fused_embedding_gather(idx, tables)        # (batch, sum(D_f))
    if cat_emb:
        return out                                    # torch.cat(embs, dim=1)
    assert len(set(dims)) == 1, (
        "stack path (cat_emb=False) needs equal embedding dims")
    return out.reshape(batch, num_f, dims[0])         # torch.stack(embs, dim=1)


def make_tables(key, num_embeddings_list, embedding_dim_list):
    tables = []
    for i, (n, d) in enumerate(zip(num_embeddings_list, embedding_dim_list)):
        k = jax.random.fold_in(key, i)
        # nn.Embedding default init ~ N(0, 1); table has n + 1 rows.
        tables.append(jax.random.normal(k, (n + 1, d), dtype=jnp.float32))
    return tables


def make_indices(key, num_embeddings_list, batch):
    cols = []
    for i, n in enumerate(num_embeddings_list):
        kc = jax.random.fold_in(key, i)
        cols.append(jax.random.randint(kc, (batch,), 0, n + 1, dtype=jnp.int32))
    return jnp.stack(cols, axis=1)                    # (batch, num_features)


if __name__ == "__main__":
    key = jax.random.PRNGKey(0)
    k_tab, k_idx = jax.random.split(key)
    batch = 8

    # --- Config 1: equal dims (valid for both stack and cat paths). ---
    num_embeddings_list = [10, 20, 30]
    embedding_dim_list = [32, 32, 32]
    tables = make_tables(k_tab, num_embeddings_list, embedding_dim_list)
    x = make_indices(k_idx, num_embeddings_list, batch)
    ref_rows = [jnp.take(tables[i], x[:, i], axis=0) for i in range(x.shape[1])]

    out_stack = jax.block_until_ready(
        one_hot_embedding_forward(x, tables, cat_emb=False))
    ref_stack = jnp.stack(ref_rows, axis=1)
    assert out_stack.shape == (batch, len(tables), embedding_dim_list[0])
    assert jnp.allclose(out_stack, ref_stack, atol=1e-5)

    out_cat = jax.block_until_ready(
        one_hot_embedding_forward(x, tables, cat_emb=True))
    ref_cat = jnp.concatenate(ref_rows, axis=1)
    assert out_cat.shape == (batch, sum(embedding_dim_list))
    assert jnp.allclose(out_cat, ref_cat, atol=1e-5)

    # --- Config 2: ragged dims (cat_emb=True path only, like the module). ---
    num_embeddings_list2 = [5, 40, 17]
    embedding_dim_list2 = [32, 64, 128]
    tables2 = make_tables(jax.random.fold_in(k_tab, 99),
                          num_embeddings_list2, embedding_dim_list2)
    x2 = make_indices(jax.random.fold_in(k_idx, 99), num_embeddings_list2, batch)
    ref_rows2 = [jnp.take(tables2[i], x2[:, i], axis=0) for i in range(x2.shape[1])]

    out_cat2 = jax.block_until_ready(
        one_hot_embedding_forward(x2, tables2, cat_emb=True))
    ref_cat2 = jnp.concatenate(ref_rows2, axis=1)
    assert out_cat2.shape == (batch, sum(embedding_dim_list2))
    assert jnp.allclose(out_cat2, ref_cat2, atol=1e-5)

    # --- Config 3: batch not a multiple of 8 (exercises the padding path). ---
    batch3 = 5
    x3 = make_indices(jax.random.fold_in(k_idx, 7), num_embeddings_list2, batch3)
    ref_rows3 = [jnp.take(tables2[i], x3[:, i], axis=0) for i in range(x3.shape[1])]

    out_cat3 = jax.block_until_ready(
        one_hot_embedding_forward(x3, tables2, cat_emb=True))
    ref_cat3 = jnp.concatenate(ref_rows3, axis=1)
    assert out_cat3.shape == (batch3, sum(embedding_dim_list2))
    assert jnp.allclose(out_cat3, ref_cat3, atol=1e-5)

    print("KERNEL_OK")
</pallas_src>

<mosaic_0001>
module attributes {stable_mosaic.version = 11 : i64} {
  func.func @kernel(%arg0: i32, %arg1: memref<24xi32, #tpu.memory_space<smem>>, %arg2: memref<11x32xf32, #tpu.memory_space<any>>, %arg3: memref<21x32xf32, #tpu.memory_space<any>>, %arg4: memref<31x32xf32, #tpu.memory_space<any>>, %arg5: memref<8x96xf32, #tpu.memory_space<vmem>>, %arg6: memref<8x32xf32, #tpu.memory_space<vmem>>, %arg7: memref<8x32xf32, #tpu.memory_space<vmem>>, %arg8: memref<8x32xf32, #tpu.memory_space<vmem>>, %arg9: memref<!tpu.dma_semaphore, #tpu.memory_space<semaphore_mem>>) attributes {dimension_semantics = [#tpu.dimension_semantics<parallel>], iteration_bounds = array<i64: 1>, scalar_prefetch = 1 : i64, scratch_operands = 4 : i64, tpu.core_type = #tpu.core_type<tc>, window_params = [{}, {}, {}, {transform_indices = @transform_3, window_bounds = array<i64: 8, 96>}]} {
    %c24_i32 = arith.constant 24 : i32
    %0 = arith.muli %arg0, %c24_i32 : i32
    %c0_i32 = arith.constant 0 : i32
    %1 = arith.addi %0, %c0_i32 : i32
    %c0_i32_0 = arith.constant 0 : i32
    %2 = arith.addi %1, %c0_i32_0 : i32
    %3 = arith.index_cast %2 : i32 to index
    %4 = memref.load %arg1[%3] : memref<24xi32, #tpu.memory_space<smem>>
    %c0_i32_1 = arith.constant 0 : i32
    %5 = tpu.memref_slice %arg2[%4, %c0_i32_1] : memref<11x32xf32, #tpu.memory_space<any>> -> memref<1x32xf32, #tpu.memory_space<any>>
    %c0_i32_2 = arith.constant 0 : i32
    %c0_i32_3 = arith.constant 0 : i32
    %6 = tpu.memref_slice %arg6[%c0_i32_2, %c0_i32_3] : memref<8x32xf32, #tpu.memory_space<vmem>> -> memref<1x32xf32, #tpu.memory_space<vmem>>
    tpu.enqueue_dma source(%5 : memref<1x32xf32, #tpu.memory_space<any>>) target(%6 : memref<1x32xf32, #tpu.memory_space<vmem>>) target_semaphore(%arg9 : memref<!tpu.dma_semaphore, #tpu.memory_space<semaphore_mem>>)
    %c0_i32_4 = arith.constant 0 : i32
    %7 = arith.addi %0, %c0_i32_4 : i32
    %c1_i32 = arith.constant 1 : i32
    %8 = arith.addi %7, %c1_i32 : i32
    %9 = arith.index_cast %8 : i32 to index
    %10 = memref.load %arg1[%9] : memref<24xi32, #tpu.memory_space<smem>>
    %c0_i32_5 = arith.constant 0 : i32
    %11 = tpu.memref_slice %arg3[%10, %c0_i32_5] : memref<21x32xf32, #tpu.memory_space<any>> -> memref<1x32xf32, #tpu.memory_space<any>>
    %c0_i32_6 = arith.constant 0 : i32
    %c0_i32_7 = arith.constant 0 : i32
    %12 = tpu.memref_slice %arg7[%c0_i32_6, %c0_i32_7] : memref<8x32xf32, #tpu.memory_space<vmem>> -> memref<1x32xf32, #tpu.memory_space<vmem>>
    tpu.enqueue_dma source(%11 : memref<1x32xf32, #tpu.memory_space<any>>) target(%12 : memref<1x32xf32, #tpu.memory_space<vmem>>) target_semaphore(%arg9 : memref<!tpu.dma_semaphore, #tpu.memory_space<semaphore_mem>>)
    %c0_i32_8 = arith.constant 0 : i32
    %13 = arith.addi %0, %c0_i32_8 : i32
    %c2_i32 = arith.constant 2 : i32
    %14 = arith.addi %13, %c2_i32 : i32
    %15 = arith.index_cast %14 : i32 to index
    %16 = memref.load %arg1[%15] : memref<24xi32, #tpu.memory_space<smem>>
    %c0_i32_9 = arith.constant 0 : i32
    %17 = tpu.memref_slice %arg4[%16, %c0_i32_9] : memref<31x32xf32, #tpu.memory_space<any>> -> memref<1x32xf32, #tpu.memory_space<any>>
    %c0_i32_10 = arith.constant 0 : i32
    %c0_i32_11 = arith.constant 0 : i32
    %18 = tpu.memref_slice %arg8[%c0_i32_10, %c0_i32_11] : memref<8x32xf32, #tpu.memory_space<vmem>> -> memref<1x32xf32, #tpu.memory_space<vmem>>
    tpu.enqueue_dma source(%17 : memref<1x32xf32, #tpu.memory_space<any>>) target(%18 : memref<1x32xf32, #tpu.memory_space<vmem>>) target_semaphore(%arg9 : memref<!tpu.dma_semaphore, #tpu.memory_space<semaphore_mem>>)
    %c3_i32 = arith.constant 3 : i32
    %19 = arith.addi %0, %c3_i32 : i32
    %c0_i32_12 = arith.constant 0 : i32
    %20 = arith.addi %19, %c0_i32_12 : i32
    %21 = arith.index_cast %20 : i32 to index
    %22 = memref.load %arg1[%21] : memref<24xi32, #tpu.memory_space<smem>>
    %c0_i32_13 = arith.constant 0 : i32
    %23 = tpu.memref_slice %arg2[%22, %c0_i32_13] : memref<11x32xf32, #tpu.memory_space<any>> -> memref<1x32xf32, #tpu.memory_space<any>>
    %c1_i32_14 = arith.constant 1 : i32
    %c0_i32_15 = arith.constant 0 : i32
    %24 = tpu.memref_slice %arg6[%c1_i32_14, %c0_i32_15] : memref<8x32xf32, #tpu.memory_space<vmem>> -> memref<1x32xf32, #tpu.memory_space<vmem>>
    tpu.enqueue_dma source(%23 : memref<1x32xf32, #tpu.memory_space<any>>) target(%24 : memref<1x32xf32, #tpu.memory_space<vmem>>) target_semaphore(%arg9 : memref<!tpu.dma_semaphore, #tpu.memory_space<semaphore_mem>>)
    %c3_i32_16 = arith.constant 3 : i32
    %25 = arith.addi %0, %c3_i32_16 : i32
    %c1_i32_17 = arith.constant 1 : i32
    %26 = arith.addi %25, %c1_i32_17 : i32
    %27 = arith.index_cast %26 : i32 to index
    %28 = memref.load %arg1[%27] : memref<24xi32, #tpu.memory_space<smem>>
    %c0_i32_18 = arith.constant 0 : i32
    %29 = tpu.memref_slice %arg3[%28, %c0_i32_18] : memref<21x32xf32, #tpu.memory_space<any>> -> memref<1x32xf32, #tpu.memory_space<any>>
    %c1_i32_19 = arith.constant 1 : i32
    %c0_i32_20 = arith.constant 0 : i32
    %30 = tpu.memref_slice %arg7[%c1_i32_19, %c0_i32_20] : memref<8x32xf32, #tpu.memory_space<vmem>> -> memref<1x32xf32, #tpu.memory_space<vmem>>
    tpu.enqueue_dma source(%29 : memref<1x32xf32, #tpu.memory_space<any>>) target(%30 : memref<1x32xf32, #tpu.memory_space<vmem>>) target_semaphore(%arg9 : memref<!tpu.dma_semaphore, #tpu.memory_space<semaphore_mem>>)
    %c3_i32_21 = arith.constant 3 : i32
    %31 = arith.addi %0, %c3_i32_21 : i32
    %c2_i32_22 = arith.constant 2 : i32
    %32 = arith.addi %31, %c2_i32_22 : i32
    %33 = arith.index_cast %32 : i32 to index
    %34 = memref.load %arg1[%33] : memref<24xi32, #tpu.memory_space<smem>>
    %c0_i32_23 = arith.constant 0 : i32
    %35 = tpu.memref_slice %arg4[%34, %c0_i32_23] : memref<31x32xf32, #tpu.memory_space<any>> -> memref<1x32xf32, #tpu.memory_space<any>>
    %c1_i32_24 = arith.constant 1 : i32
    %c0_i32_25 = arith.constant 0 : i32
    %36 = tpu.memref_slice %arg8[%c1_i32_24, %c0_i32_25] : memref<8x32xf32, #tpu.memory_space<vmem>> -> memref<1x32xf32, #tpu.memory_space<vmem>>
    tpu.enqueue_dma source(%35 : memref<1x32xf32, #tpu.memory_space<any>>) target(%36 : memref<1x32xf32, #tpu.memory_space<vmem>>) target_semaphore(%arg9 : memref<!tpu.dma_semaphore, #tpu.memory_space<semaphore_mem>>)
    %c6_i32 = arith.constant 6 : i32
    %37 = arith.addi %0, %c6_i32 : i32
    %c0_i32_26 = arith.constant 0 : i32
    %38 = arith.addi %37, %c0_i32_26 : i32
    %39 = arith.index_cast %38 : i32 to index
    %40 = memref.load %arg1[%39] : memref<24xi32, #tpu.memory_space<smem>>
    %c0_i32_27 = arith.constant 0 : i32
    %41 = tpu.memref_slice %arg2[%40, %c0_i32_27] : memref<11x32xf32, #tpu.memory_space<any>> -> memref<1x32xf32, #tpu.memory_space<any>>
    %c2_i32_28 = arith.constant 2 : i32
    %c0_i32_29 = arith.constant 0 : i32
    %42 = tpu.memref_slice %arg6[%c2_i32_28, %c0_i32_29] : memref<8x32xf32, #tpu.memory_space<vmem>> -> memref<1x32xf32, #tpu.memory_space<vmem>>
    tpu.enqueue_dma source(%41 : memref<1x32xf32, #tpu.memory_space<any>>) target(%42 : memref<1x32xf32, #tpu.memory_space<vmem>>) target_semaphore(%arg9 : memref<!tpu.dma_semaphore, #tpu.memory_space<semaphore_mem>>)
    %c6_i32_30 = arith.constant 6 : i32
    %43 = arith.addi %0, %c6_i32_30 : i32
    %c1_i32_31 = arith.constant 1 : i32
    %44 = arith.addi %43, %c1_i32_31 : i32
    %45 = arith.index_cast %44 : i32 to index
    %46 = memref.load %arg1[%45] : memref<24xi32, #tpu.memory_space<smem>>
    %c0_i32_32 = arith.constant 0 : i32
    %47 = tpu.memref_slice %arg3[%46, %c0_i32_32] : memref<21x32xf32, #tpu.memory_space<any>> -> memref<1x32xf32, #tpu.memory_space<any>>
    %c2_i32_33 = arith.constant 2 : i32
    %c0_i32_34 = arith.constant 0 : i32
    %48 = tpu.memref_slice %arg7[%c2_i32_33, %c0_i32_34] : memref<8x32xf32, #tpu.memory_space<vmem>> -> memref<1x32xf32, #tpu.memory_space<vmem>>
    tpu.enqueue_dma source(%47 : memref<1x32xf32, #tpu.memory_space<any>>) target(%48 : memref<1x32xf32, #tpu.memory_space<vmem>>) target_semaphore(%arg9 : memref<!tpu.dma_semaphore, #tpu.memory_space<semaphore_mem>>)
    %c6_i32_35 = arith.constant 6 : i32
    %49 = arith.addi %0, %c6_i32_35 : i32
    %c2_i32_36 = arith.constant 2 : i32
    %50 = arith.addi %49, %c2_i32_36 : i32
    %51 = arith.index_cast %50 : i32 to index
    %52 = memref.load %arg1[%51] : memref<24xi32, #tpu.memory_space<smem>>
    %c0_i32_37 = arith.constant 0 : i32
    %53 = tpu.memref_slice %arg4[%52, %c0_i32_37] : memref<31x32xf32, #tpu.memory_space<any>> -> memref<1x32xf32, #tpu.memory_space<any>>
    %c2_i32_38 = arith.constant 2 : i32
    %c0_i32_39 = arith.constant 0 : i32
    %54 = tpu.memref_slice %arg8[%c2_i32_38, %c0_i32_39] : memref<8x32xf32, #tpu.memory_space<vmem>> -> memref<1x32xf32, #tpu.memory_space<vmem>>
    tpu.enqueue_dma source(%53 : memref<1x32xf32, #tpu.memory_space<any>>) target(%54 : memref<1x32xf32, #tpu.memory_space<vmem>>) target_semaphore(%arg9 : memref<!tpu.dma_semaphore, #tpu.memory_space<semaphore_mem>>)
    %c9_i32 = arith.constant 9 : i32
    %55 = arith.addi %0, %c9_i32 : i32
    %c0_i32_40 = arith.constant 0 : i32
    %56 = arith.addi %55, %c0_i32_40 : i32
    %57 = arith.index_cast %56 : i32 to index
    %58 = memref.load %arg1[%57] : memref<24xi32, #tpu.memory_space<smem>>
    %c0_i32_41 = arith.constant 0 : i32
    %59 = tpu.memref_slice %arg2[%58, %c0_i32_41] : memref<11x32xf32, #tpu.memory_space<any>> -> memref<1x32xf32, #tpu.memory_space<any>>
    %c3_i32_42 = arith.constant 3 : i32
    %c0_i32_43 = arith.constant 0 : i32
    %60 = tpu.memref_slice %arg6[%c3_i32_42, %c0_i32_43] : memref<8x32xf32, #tpu.memory_space<vmem>> -> memref<1x32xf32, #tpu.memory_space<vmem>>
    tpu.enqueue_dma source(%59 : memref<1x32xf32, #tpu.memory_space<any>>) target(%60 : memref<1x32xf32, #tpu.memory_space<vmem>>) target_semaphore(%arg9 : memref<!tpu.dma_semaphore, #tpu.memory_space<semaphore_mem>>)
    %c9_i32_44 = arith.constant 9 : i32
    %61 = arith.addi %0, %c9_i32_44 : i32
    %c1_i32_45 = arith.constant 1 : i32
    %62 = arith.addi %61, %c1_i32_45 : i32
    %63 = arith.index_cast %62 : i32 to index
    %64 = memref.load %arg1[%63] : memref<24xi32, #tpu.memory_space<smem>>
    %c0_i32_46 = arith.constant 0 : i32
    %65 = tpu.memref_slice %arg3[%64, %c0_i32_46] : memref<21x32xf32, #tpu.memory_space<any>> -> memref<1x32xf32, #tpu.memory_space<any>>
    %c3_i32_47 = arith.constant 3 : i32
    %c0_i32_48 = arith.constant 0 : i32
    %66 = tpu.memref_slice %arg7[%c3_i32_47, %c0_i32_48] : memref<8x32xf32, #tpu.memory_space<vmem>> -> memref<1x32xf32, #tpu.memory_space<vmem>>
    tpu.enqueue_dma source(%65 : memref<1x32xf32, #tpu.memory_space<any>>) target(%66 : memref<1x32xf32, #tpu.memory_space<vmem>>) target_semaphore(%arg9 : memref<!tpu.dma_semaphore, #tpu.memory_space<semaphore_mem>>)
    %c9_i32_49 = arith.constant 9 : i32
    %67 = arith.addi %0, %c9_i32_49 : i32
    %c2_i32_50 = arith.constant 2 : i32
    %68 = arith.addi %67, %c2_i32_50 : i32
    %69 = arith.index_cast %68 : i32 to index
    %70 = memref.load %arg1[%69] : memref<24xi32, #tpu.memory_space<smem>>
    %c0_i32_51 = arith.constant 0 : i32
    %71 = tpu.memref_slice %arg4[%70, %c0_i32_51] : memref<31x32xf32, #tpu.memory_space<any>> -> memref<1x32xf32, #tpu.memory_space<any>>
    %c3_i32_52 = arith.constant 3 : i32
    %c0_i32_53 = arith.constant 0 : i32
    %72 = tpu.memref_slice %arg8[%c3_i32_52, %c0_i32_53] : memref<8x32xf32, #tpu.memory_space<vmem>> -> memref<1x32xf32, #tpu.memory_space<vmem>>
    tpu.enqueue_dma source(%71 : memref<1x32xf32, #tpu.memory_space<any>>) target(%72 : memref<1x32xf32, #tpu.memory_space<vmem>>) target_semaphore(%arg9 : memref<!tpu.dma_semaphore, #tpu.memory_space<semaphore_mem>>)
    %c12_i32 = arith.constant 12 : i32
    %73 = arith.addi %0, %c12_i32 : i32
    %c0_i32_54 = arith.constant 0 : i32
    %74 = arith.addi %73, %c0_i32_54 : i32
    %75 = arith.index_cast %74 : i32 to index
    %76 = memref.load %arg1[%75] : memref<24xi32, #tpu.memory_space<smem>>
    %c0_i32_55 = arith.constant 0 : i32
    %77 = tpu.memref_slice %arg2[%76, %c0_i32_55] : memref<11x32xf32, #tpu.memory_space<any>> -> memref<1x32xf32, #tpu.memory_space<any>>
    %c4_i32 = arith.constant 4 : i32
    %c0_i32_56 = arith.constant 0 : i32
    %78 = tpu.memref_slice %arg6[%c4_i32, %c0_i32_56] : memref<8x32xf32, #tpu.memory_space<vmem>> -> memref<1x32xf32, #tpu.memory_space<vmem>>
    tpu.enqueue_dma source(%77 : memref<1x32xf32, #tpu.memory_space<any>>) target(%78 : memref<1x32xf32, #tpu.memory_space<vmem>>) target_semaphore(%arg9 : memref<!tpu.dma_semaphore, #tpu.memory_space<semaphore_mem>>)
    %c12_i32_57 = arith.constant 12 : i32
    %79 = arith.addi %0, %c12_i32_57 : i32
    %c1_i32_58 = arith.constant 1 : i32
    %80 = arith.addi %79, %c1_i32_58 : i32
    %81 = arith.index_cast %80 : i32 to index
    %82 = memref.load %arg1[%81] : memref<24xi32, #tpu.memory_space<smem>>
    %c0_i32_59 = arith.constant 0 : i32
    %83 = tpu.memref_slice %arg3[%82, %c0_i32_59] : memref<21x32xf32, #tpu.memory_space<any>> -> memref<1x32xf32, #tpu.memory_space<any>>
    %c4_i32_60 = arith.constant 4 : i32
    %c0_i32_61 = arith.constant 0 : i32
    %84 = tpu.memref_slice %arg7[%c4_i32_60, %c0_i32_61] : memref<8x32xf32, #tpu.memory_space<vmem>> -> memref<1x32xf32, #tpu.memory_space<vmem>>
    tpu.enqueue_dma source(%83 : memref<1x32xf32, #tpu.memory_space<any>>) target(%84 : memref<1x32xf32, #tpu.memory_space<vmem>>) target_semaphore(%arg9 : memref<!tpu.dma_semaphore, #tpu.memory_space<semaphore_mem>>)
    %c12_i32_62 = arith.constant 12 : i32
    %85 = arith.addi %0, %c12_i32_62 : i32
    %c2_i32_63 = arith.constant 2 : i32
    %86 = arith.addi %85, %c2_i32_63 : i32
    %87 = arith.index_cast %86 : i32 to index
    %88 = memref.load %arg1[%87] : memref<24xi32, #tpu.memory_space<smem>>
    %c0_i32_64 = arith.constant 0 : i32
    %89 = tpu.memref_slice %arg4[%88, %c0_i32_64] : memref<31x32xf32, #tpu.memory_space<any>> -> memref<1x32xf32, #tpu.memory_space<any>>
    %c4_i32_65 = arith.constant 4 : i32
    %c0_i32_66 = arith.constant 0 : i32
    %90 = tpu.memref_slice %arg8[%c4_i32_65, %c0_i32_66] : memref<8x32xf32, #tpu.memory_space<vmem>> -> memref<1x32xf32, #tpu.memory_space<vmem>>
    tpu.enqueue_dma source(%89 : memref<1x32xf32, #tpu.memory_space<any>>) target(%90 : memref<1x32xf32, #tpu.memory_space<vmem>>) target_semaphore(%arg9 : memref<!tpu.dma_semaphore, #tpu.memory_space<semaphore_mem>>)
    %c15_i32 = arith.constant 15 : i32
    %91 = arith.addi %0, %c15_i32 : i32
    %c0_i32_67 = arith.constant 0 : i32
    %92 = arith.addi %91, %c0_i32_67 : i32
    %93 = arith.index_cast %92 : i32 to index
    %94 = memref.load %arg1[%93] : memref<24xi32, #tpu.memory_space<smem>>
    %c0_i32_68 = arith.constant 0 : i32
    %95 = tpu.memref_slice %arg2[%94, %c0_i32_68] : memref<11x32xf32, #tpu.memory_space<any>> -> memref<1x32xf32, #tpu.memory_space<any>>
    %c5_i32 = arith.constant 5 : i32
    %c0_i32_69 = arith.constant 0 : i32
    %96 = tpu.memref_slice %arg6[%c5_i32, %c0_i32_69] : memref<8x32xf32, #tpu.memory_space<vmem>> -> memref<1x32xf32, #tpu.memory_space<vmem>>
    tpu.enqueue_dma source(%95 : memref<1x32xf32, #tpu.memory_space<any>>) target(%96 : memref<1x32xf32, #tpu.memory_space<vmem>>) target_semaphore(%arg9 : memref<!tpu.dma_semaphore, #tpu.memory_space<semaphore_mem>>)
    %c15_i32_70 = arith.constant 15 : i32
    %97 = arith.addi %0, %c15_i32_70 : i32
    %c1_i32_71 = arith.constant 1 : i32
    %98 = arith.addi %97, %c1_i32_71 : i32
    %99 = arith.index_cast %98 : i32 to index
    %100 = memref.load %arg1[%99] : memref<24xi32, #tpu.memory_space<smem>>
    %c0_i32_72 = arith.constant 0 : i32
    %101 = tpu.memref_slice %arg3[%100, %c0_i32_72] : memref<21x32xf32, #tpu.memory_space<any>> -> memref<1x32xf32, #tpu.memory_space<any>>
    %c5_i32_73 = arith.constant 5 : i32
    %c0_i32_74 = arith.constant 0 : i32
    %102 = tpu.memref_slice %arg7[%c5_i32_73, %c0_i32_74] : memref<8x32xf32, #tpu.memory_space<vmem>> -> memref<1x32xf32, #tpu.memory_space<vmem>>
    tpu.enqueue_dma source(%101 : memref<1x32xf32, #tpu.memory_space<any>>) target(%102 : memref<1x32xf32, #tpu.memory_space<vmem>>) target_semaphore(%arg9 : memref<!tpu.dma_semaphore, #tpu.memory_space<semaphore_mem>>)
    %c15_i32_75 = arith.constant 15 : i32
    %103 = arith.addi %0, %c15_i32_75 : i32
    %c2_i32_76 = arith.constant 2 : i32
    %104 = arith.addi %103, %c2_i32_76 : i32
    %105 = arith.index_cast %104 : i32 to index
    %106 = memref.load %arg1[%105] : memref<24xi32, #tpu.memory_space<smem>>
    %c0_i32_77 = arith.constant 0 : i32
    %107 = tpu.memref_slice %arg4[%106, %c0_i32_77] : memref<31x32xf32, #tpu.memory_space<any>> -> memref<1x32xf32, #tpu.memory_space<any>>
    %c5_i32_78 = arith.constant 5 : i32
    %c0_i32_79 = arith.constant 0 : i32
    %108 = tpu.memref_slice %arg8[%c5_i32_78, %c0_i32_79] : memref<8x32xf32, #tpu.memory_space<vmem>> -> memref<1x32xf32, #tpu.memory_space<vmem>>
    tpu.enqueue_dma source(%107 : memref<1x32xf32, #tpu.memory_space<any>>) target(%108 : memref<1x32xf32, #tpu.memory_space<vmem>>) target_semaphore(%arg9 : memref<!tpu.dma_semaphore, #tpu.memory_space<semaphore_mem>>)
    %c18_i32 = arith.constant 18 : i32
    %109 = arith.addi %0, %c18_i32 : i32
    %c0_i32_80 = arith.constant 0 : i32
    %110 = arith.addi %109, %c0_i32_80 : i32
    %111 = arith.index_cast %110 : i32 to index
    %112 = memref.load %arg1[%111] : memref<24xi32, #tpu.memory_space<smem>>
    %c0_i32_81 = arith.constant 0 : i32
    %113 = tpu.memref_slice %arg2[%112, %c0_i32_81] : memref<11x32xf32, #tpu.memory_space<any>> -> memref<1x32xf32, #tpu.memory_space<any>>
    %c6_i32_82 = arith.constant 6 : i32
    %c0_i32_83 = arith.constant 0 : i32
    %114 = tpu.memref_slice %arg6[%c6_i32_82, %c0_i32_83] : memref<8x32xf32, #tpu.memory_space<vmem>> -> memref<1x32xf32, #tpu.memory_space<vmem>>
    tpu.enqueue_dma source(%113 : memref<1x32xf32, #tpu.memory_space<any>>) target(%114 : memref<1x32xf32, #tpu.memory_space<vmem>>) target_semaphore(%arg9 : memref<!tpu.dma_semaphore, #tpu.memory_space<semaphore_mem>>)
    %c18_i32_84 = arith.constant 18 : i32
    %115 = arith.addi %0, %c18_i32_84 : i32
    %c1_i32_85 = arith.constant 1 : i32
    %116 = arith.addi %115, %c1_i32_85 : i32
    %117 = arith.index_cast %116 : i32 to index
    %118 = memref.load %arg1[%117] : memref<24xi32, #tpu.memory_space<smem>>
    %c0_i32_86 = arith.constant 0 : i32
    %119 = tpu.memref_slice %arg3[%118, %c0_i32_86] : memref<21x32xf32, #tpu.memory_space<any>> -> memref<1x32xf32, #tpu.memory_space<any>>
    %c6_i32_87 = arith.constant 6 : i32
    %c0_i32_88 = arith.constant 0 : i32
    %120 = tpu.memref_slice %arg7[%c6_i32_87, %c0_i32_88] : memref<8x32xf32, #tpu.memory_space<vmem>> -> memref<1x32xf32, #tpu.memory_space<vmem>>
    tpu.enqueue_dma source(%119 : memref<1x32xf32, #tpu.memory_space<any>>) target(%120 : memref<1x32xf32, #tpu.memory_space<vmem>>) target_semaphore(%arg9 : memref<!tpu.dma_semaphore, #tpu.memory_space<semaphore_mem>>)
    %c18_i32_89 = arith.constant 18 : i32
    %121 = arith.addi %0, %c18_i32_89 : i32
    %c2_i32_90 = arith.constant 2 : i32
    %122 = arith.addi %121, %c2_i32_90 : i32
    %123 = arith.index_cast %122 : i32 to index
    %124 = memref.load %arg1[%123] : memref<24xi32, #tpu.memory_space<smem>>
    %c0_i32_91 = arith.constant 0 : i32
    %125 = tpu.memref_slice %arg4[%124, %c0_i32_91] : memref<31x32xf32, #tpu.memory_space<any>> -> memref<1x32xf32, #tpu.memory_space<any>>
    %c6_i32_92 = arith.constant 6 : i32
    %c0_i32_93 = arith.constant 0 : i32
    %126 = tpu.memref_slice %arg8[%c6_i32_92, %c0_i32_93] : memref<8x32xf32, #tpu.memory_space<vmem>> -> memref<1x32xf32, #tpu.memory_space<vmem>>
    tpu.enqueue_dma source(%125 : memref<1x32xf32, #tpu.memory_space<any>>) target(%126 : memref<1x32xf32, #tpu.memory_space<vmem>>) target_semaphore(%arg9 : memref<!tpu.dma_semaphore, #tpu.memory_space<semaphore_mem>>)
    %c21_i32 = arith.constant 21 : i32
    %127 = arith.addi %0, %c21_i32 : i32
    %c0_i32_94 = arith.constant 0 : i32
    %128 = arith.addi %127, %c0_i32_94 : i32
    %129 = arith.index_cast %128 : i32 to index
    %130 = memref.load %arg1[%129] : memref<24xi32, #tpu.memory_space<smem>>
    %c0_i32_95 = arith.constant 0 : i32
    %131 = tpu.memref_slice %arg2[%130, %c0_i32_95] : memref<11x32xf32, #tpu.memory_space<any>> -> memref<1x32xf32, #tpu.memory_space<any>>
    %c7_i32 = arith.constant 7 : i32
    %c0_i32_96 = arith.constant 0 : i32
    %132 = tpu.memref_slice %arg6[%c7_i32, %c0_i32_96] : memref<8x32xf32, #tpu.memory_space<vmem>> -> memref<1x32xf32, #tpu.memory_space<vmem>>
    tpu.enqueue_dma source(%131 : memref<1x32xf32, #tpu.memory_space<any>>) target(%132 : memref<1x32xf32, #tpu.memory_space<vmem>>) target_semaphore(%arg9 : memref<!tpu.dma_semaphore, #tpu.memory_space<semaphore_mem>>)
    %c21_i32_97 = arith.constant 21 : i32
    %133 = arith.addi %0, %c21_i32_97 : i32
    %c1_i32_98 = arith.constant 1 : i32
    %134 = arith.addi %133, %c1_i32_98 : i32
    %135 = arith.index_cast %134 : i32 to index
    %136 = memref.load %arg1[%135] : memref<24xi32, #tpu.memory_space<smem>>
    %c0_i32_99 = arith.constant 0 : i32
    %137 = tpu.memref_slice %arg3[%136, %c0_i32_99] : memref<21x32xf32, #tpu.memory_space<any>> -> memref<1x32xf32, #tpu.memory_space<any>>
    %c7_i32_100 = arith.constant 7 : i32
    %c0_i32_101 = arith.constant 0 : i32
    %138 = tpu.memref_slice %arg7[%c7_i32_100, %c0_i32_101] : memref<8x32xf32, #tpu.memory_space<vmem>> -> memref<1x32xf32, #tpu.memory_space<vmem>>
    tpu.enqueue_dma source(%137 : memref<1x32xf32, #tpu.memory_space<any>>) target(%138 : memref<1x32xf32, #tpu.memory_space<vmem>>) target_semaphore(%arg9 : memref<!tpu.dma_semaphore, #tpu.memory_space<semaphore_mem>>)
    %c21_i32_102 = arith.constant 21 : i32
    %139 = arith.addi %0, %c21_i32_102 : i32
    %c2_i32_103 = arith.constant 2 : i32
    %140 = arith.addi %139, %c2_i32_103 : i32
    %141 = arith.index_cast %140 : i32 to index
    %142 = memref.load %arg1[%141] : memref<24xi32, #tpu.memory_space<smem>>
    %c0_i32_104 = arith.constant 0 : i32
    %143 = tpu.memref_slice %arg4[%142, %c0_i32_104] : memref<31x32xf32, #tpu.memory_space<any>> -> memref<1x32xf32, #tpu.memory_space<any>>
    %c7_i32_105 = arith.constant 7 : i32
    %c0_i32_106 = arith.constant 0 : i32
    %144 = tpu.memref_slice %arg8[%c7_i32_105, %c0_i32_106] : memref<8x32xf32, #tpu.memory_space<vmem>> -> memref<1x32xf32, #tpu.memory_space<vmem>>
    tpu.enqueue_dma source(%143 : memref<1x32xf32, #tpu.memory_space<any>>) target(%144 : memref<1x32xf32, #tpu.memory_space<vmem>>) target_semaphore(%arg9 : memref<!tpu.dma_semaphore, #tpu.memory_space<semaphore_mem>>)
    %c0_i32_107 = arith.constant 0 : i32
    %145 = tpu.memref_slice %arg2[%4, %c0_i32_107] : memref<11x32xf32, #tpu.memory_space<any>> -> memref<1x32xf32, #tpu.memory_space<any>>
    %c0_i32_108 = arith.constant 0 : i32
    %c0_i32_109 = arith.constant 0 : i32
    %146 = tpu.memref_slice %arg6[%c0_i32_108, %c0_i32_109] : memref<8x32xf32, #tpu.memory_space<vmem>> -> memref<1x32xf32, #tpu.memory_space<vmem>>
    tpu.wait_dma2 semaphore(%arg9 : memref<!tpu.dma_semaphore, #tpu.memory_space<semaphore_mem>>) src(%145 : memref<1x32xf32, #tpu.memory_space<any>>) dst(%146 : memref<1x32xf32, #tpu.memory_space<vmem>>)
    %c0_i32_110 = arith.constant 0 : i32
    %147 = tpu.memref_slice %arg3[%10, %c0_i32_110] : memref<21x32xf32, #tpu.memory_space<any>> -> memref<1x32xf32, #tpu.memory_space<any>>
    %c0_i32_111 = arith.constant 0 : i32
    %c0_i32_112 = arith.constant 0 : i32
    %148 = tpu.memref_slice %arg7[%c0_i32_111, %c0_i32_112] : memref<8x32xf32, #tpu.memory_space<vmem>> -> memref<1x32xf32, #tpu.memory_space<vmem>>
    tpu.wait_dma2 semaphore(%arg9 : memref<!tpu.dma_semaphore, #tpu.memory_space<semaphore_mem>>) src(%147 : memref<1x32xf32, #tpu.memory_space<any>>) dst(%148 : memref<1x32xf32, #tpu.memory_space<vmem>>)
    %c0_i32_113 = arith.constant 0 : i32
    %149 = tpu.memref_slice %arg4[%16, %c0_i32_113] : memref<31x32xf32, #tpu.memory_space<any>> -> memref<1x32xf32, #tpu.memory_space<any>>
    %c0_i32_114 = arith.constant 0 : i32
    %c0_i32_115 = arith.constant 0 : i32
    %150 = tpu.memref_slice %arg8[%c0_i32_114, %c0_i32_115] : memref<8x32xf32, #tpu.memory_space<vmem>> -> memref<1x32xf32, #tpu.memory_space<vmem>>
    tpu.wait_dma2 semaphore(%arg9 : memref<!tpu.dma_semaphore, #tpu.memory_space<semaphore_mem>>) src(%149 : memref<1x32xf32, #tpu.memory_space<any>>) dst(%150 : memref<1x32xf32, #tpu.memory_space<vmem>>)
    %c0_i32_116 = arith.constant 0 : i32
    %151 = tpu.memref_slice %arg2[%22, %c0_i32_116] : memref<11x32xf32, #tpu.memory_space<any>> -> memref<1x32xf32, #tpu.memory_space<any>>
    %c1_i32_117 = arith.constant 1 : i32
    %c0_i32_118 = arith.constant 0 : i32
    %152 = tpu.memref_slice %arg6[%c1_i32_117, %c0_i32_118] : memref<8x32xf32, #tpu.memory_space<vmem>> -> memref<1x32xf32, #tpu.memory_space<vmem>>
    tpu.wait_dma2 semaphore(%arg9 : memref<!tpu.dma_semaphore, #tpu.memory_space<semaphore_mem>>) src(%151 : memref<1x32xf32, #tpu.memory_space<any>>) dst(%152 : memref<1x32xf32, #tpu.memory_space<vmem>>)
    %c0_i32_119 = arith.constant 0 : i32
    %153 = tpu.memref_slice %arg3[%28, %c0_i32_119] : memref<21x32xf32, #tpu.memory_space<any>> -> memref<1x32xf32, #tpu.memory_space<any>>
    %c1_i32_120 = arith.constant 1 : i32
    %c0_i32_121 = arith.constant 0 : i32
    %154 = tpu.memref_slice %arg7[%c1_i32_120, %c0_i32_121] : memref<8x32xf32, #tpu.memory_space<vmem>> -> memref<1x32xf32, #tpu.memory_space<vmem>>
    tpu.wait_dma2 semaphore(%arg9 : memref<!tpu.dma_semaphore, #tpu.memory_space<semaphore_mem>>) src(%153 : memref<1x32xf32, #tpu.memory_space<any>>) dst(%154 : memref<1x32xf32, #tpu.memory_space<vmem>>)
    %c0_i32_122 = arith.constant 0 : i32
    %155 = tpu.memref_slice %arg4[%34, %c0_i32_122] : memref<31x32xf32, #tpu.memory_space<any>> -> memref<1x32xf32, #tpu.memory_space<any>>
    %c1_i32_123 = arith.constant 1 : i32
    %c0_i32_124 = arith.constant 0 : i32
    %156 = tpu.memref_slice %arg8[%c1_i32_123, %c0_i32_124] : memref<8x32xf32, #tpu.memory_space<vmem>> -> memref<1x32xf32, #tpu.memory_space<vmem>>
    tpu.wait_dma2 semaphore(%arg9 : memref<!tpu.dma_semaphore, #tpu.memory_space<semaphore_mem>>) src(%155 : memref<1x32xf32, #tpu.memory_space<any>>) dst(%156 : memref<1x32xf32, #tpu.memory_space<vmem>>)
    %c0_i32_125 = arith.constant 0 : i32
    %157 = tpu.memref_slice %arg2[%40, %c0_i32_125] : memref<11x32xf32, #tpu.memory_space<any>> -> memref<1x32xf32, #tpu.memory_space<any>>
    %c2_i32_126 = arith.constant 2 : i32
    %c0_i32_127 = arith.constant 0 : i32
    %158 = tpu.memref_slice %arg6[%c2_i32_126, %c0_i32_127] : memref<8x32xf32, #tpu.memory_space<vmem>> -> memref<1x32xf32, #tpu.memory_space<vmem>>
    tpu.wait_dma2 semaphore(%arg9 : memref<!tpu.dma_semaphore, #tpu.memory_space<semaphore_mem>>) src(%157 : memref<1x32xf32, #tpu.memory_space<any>>) dst(%158 : memref<1x32xf32, #tpu.memory_space<vmem>>)
    %c0_i32_128 = arith.constant 0 : i32
    %159 = tpu.memref_slice %arg3[%46, %c0_i32_128] : memref<21x32xf32, #tpu.memory_space<any>> -> memref<1x32xf32, #tpu.memory_space<any>>
    %c2_i32_129 = arith.constant 2 : i32
    %c0_i32_130 = arith.constant 0 : i32
    %160 = tpu.memref_slice %arg7[%c2_i32_129, %c0_i32_130] : memref<8x32xf32, #tpu.memory_space<vmem>> -> memref<1x32xf32, #tpu.memory_space<vmem>>
    tpu.wait_dma2 semaphore(%arg9 : memref<!tpu.dma_semaphore, #tpu.memory_space<semaphore_mem>>) src(%159 : memref<1x32xf32, #tpu.memory_space<any>>) dst(%160 : memref<1x32xf32, #tpu.memory_space<vmem>>)
    %c0_i32_131 = arith.constant 0 : i32
    %161 = tpu.memref_slice %arg4[%52, %c0_i32_131] : memref<31x32xf32, #tpu.memory_space<any>> -> memref<1x32xf32, #tpu.memory_space<any>>
    %c2_i32_132 = arith.constant 2 : i32
    %c0_i32_133 = arith.constant 0 : i32
    %162 = tpu.memref_slice %arg8[%c2_i32_132, %c0_i32_133] : memref<8x32xf32, #tpu.memory_space<vmem>> -> memref<1x32xf32, #tpu.memory_space<vmem>>
    tpu.wait_dma2 semaphore(%arg9 : memref<!tpu.dma_semaphore, #tpu.memory_space<semaphore_mem>>) src(%161 : memref<1x32xf32, #tpu.memory_space<any>>) dst(%162 : memref<1x32xf32, #tpu.memory_space<vmem>>)
    %c0_i32_134 = arith.constant 0 : i32
    %163 = tpu.memref_slice %arg2[%58, %c0_i32_134] : memref<11x32xf32, #tpu.memory_space<any>> -> memref<1x32xf32, #tpu.memory_space<any>>
    %c3_i32_135 = arith.constant 3 : i32
    %c0_i32_136 = arith.constant 0 : i32
    %164 = tpu.memref_slice %arg6[%c3_i32_135, %c0_i32_136] : memref<8x32xf32, #tpu.memory_space<vmem>> -> memref<1x32xf32, #tpu.memory_space<vmem>>
    tpu.wait_dma2 semaphore(%arg9 : memref<!tpu.dma_semaphore, #tpu.memory_space<semaphore_mem>>) src(%163 : memref<1x32xf32, #tpu.memory_space<any>>) dst(%164 : memref<1x32xf32, #tpu.memory_space<vmem>>)
    %c0_i32_137 = arith.constant 0 : i32
    %165 = tpu.memref_slice %arg3[%64, %c0_i32_137] : memref<21x32xf32, #tpu.memory_space<any>> -> memref<1x32xf32, #tpu.memory_space<any>>
    %c3_i32_138 = arith.constant 3 : i32
    %c0_i32_139 = arith.constant 0 : i32
    %166 = tpu.memref_slice %arg7[%c3_i32_138, %c0_i32_139] : memref<8x32xf32, #tpu.memory_space<vmem>> -> memref<1x32xf32, #tpu.memory_space<vmem>>
    tpu.wait_dma2 semaphore(%arg9 : memref<!tpu.dma_semaphore, #tpu.memory_space<semaphore_mem>>) src(%165 : memref<1x32xf32, #tpu.memory_space<any>>) dst(%166 : memref<1x32xf32, #tpu.memory_space<vmem>>)
    %c0_i32_140 = arith.constant 0 : i32
    %167 = tpu.memref_slice %arg4[%70, %c0_i32_140] : memref<31x32xf32, #tpu.memory_space<any>> -> memref<1x32xf32, #tpu.memory_space<any>>
    %c3_i32_141 = arith.constant 3 : i32
    %c0_i32_142 = arith.constant 0 : i32
    %168 = tpu.memref_slice %arg8[%c3_i32_141, %c0_i32_142] : memref<8x32xf32, #tpu.memory_space<vmem>> -> memref<1x32xf32, #tpu.memory_space<vmem>>
    tpu.wait_dma2 semaphore(%arg9 : memref<!tpu.dma_semaphore, #tpu.memory_space<semaphore_mem>>) src(%167 : memref<1x32xf32, #tpu.memory_space<any>>) dst(%168 : memref<1x32xf32, #tpu.memory_space<vmem>>)
    %c0_i32_143 = arith.constant 0 : i32
    %169 = tpu.memref_slice %arg2[%76, %c0_i32_143] : memref<11x32xf32, #tpu.memory_space<any>> -> memref<1x32xf32, #tpu.memory_space<any>>
    %c4_i32_144 = arith.constant 4 : i32
    %c0_i32_145 = arith.constant 0 : i32
    %170 = tpu.memref_slice %arg6[%c4_i32_144, %c0_i32_145] : memref<8x32xf32, #tpu.memory_space<vmem>> -> memref<1x32xf32, #tpu.memory_space<vmem>>
    tpu.wait_dma2 semaphore(%arg9 : memref<!tpu.dma_semaphore, #tpu.memory_space<semaphore_mem>>) src(%169 : memref<1x32xf32, #tpu.memory_space<any>>) dst(%170 : memref<1x32xf32, #tpu.memory_space<vmem>>)
    %c0_i32_146 = arith.constant 0 : i32
    %171 = tpu.memref_slice %arg3[%82, %c0_i32_146] : memref<21x32xf32, #tpu.memory_space<any>> -> memref<1x32xf32, #tpu.memory_space<any>>
    %c4_i32_147 = arith.constant 4 : i32
    %c0_i32_148 = arith.constant 0 : i32
    %172 = tpu.memref_slice %arg7[%c4_i32_147, %c0_i32_148] : memref<8x32xf32, #tpu.memory_space<vmem>> -> memref<1x32xf32, #tpu.memory_space<vmem>>
    tpu.wait_dma2 semaphore(%arg9 : memref<!tpu.dma_semaphore, #tpu.memory_space<semaphore_mem>>) src(%171 : memref<1x32xf32, #tpu.memory_space<any>>) dst(%172 : memref<1x32xf32, #tpu.memory_space<vmem>>)
    %c0_i32_149 = arith.constant 0 : i32
    %173 = tpu.memref_slice %arg4[%88, %c0_i32_149] : memref<31x32xf32, #tpu.memory_space<any>> -> memref<1x32xf32, #tpu.memory_space<any>>
    %c4_i32_150 = arith.constant 4 : i32
    %c0_i32_151 = arith.constant 0 : i32
    %174 = tpu.memref_slice %arg8[%c4_i32_150, %c0_i32_151] : memref<8x32xf32, #tpu.memory_space<vmem>> -> memref<1x32xf32, #tpu.memory_space<vmem>>
    tpu.wait_dma2 semaphore(%arg9 : memref<!tpu.dma_semaphore, #tpu.memory_space<semaphore_mem>>) src(%173 : memref<1x32xf32, #tpu.memory_space<any>>) dst(%174 : memref<1x32xf32, #tpu.memory_space<vmem>>)
    %c0_i32_152 = arith.constant 0 : i32
    %175 = tpu.memref_slice %arg2[%94, %c0_i32_152] : memref<11x32xf32, #tpu.memory_space<any>> -> memref<1x32xf32, #tpu.memory_space<any>>
    %c5_i32_153 = arith.constant 5 : i32
    %c0_i32_154 = arith.constant 0 : i32
    %176 = tpu.memref_slice %arg6[%c5_i32_153, %c0_i32_154] : memref<8x32xf32, #tpu.memory_space<vmem>> -> memref<1x32xf32, #tpu.memory_space<vmem>>
    tpu.wait_dma2 semaphore(%arg9 : memref<!tpu.dma_semaphore, #tpu.memory_space<semaphore_mem>>) src(%175 : memref<1x32xf32, #tpu.memory_space<any>>) dst(%176 : memref<1x32xf32, #tpu.memory_space<vmem>>)
    %c0_i32_155 = arith.constant 0 : i32
    %177 = tpu.memref_slice %arg3[%100, %c0_i32_155] : memref<21x32xf32, #tpu.memory_space<any>> -> memref<1x32xf32, #tpu.memory_space<any>>
    %c5_i32_156 = arith.constant 5 : i32
    %c0_i32_157 = arith.constant 0 : i32
    %178 = tpu.memref_slice %arg7[%c5_i32_156, %c0_i32_157] : memref<8x32xf32, #tpu.memory_space<vmem>> -> memref<1x32xf32, #tpu.memory_space<vmem>>
    tpu.wait_dma2 semaphore(%arg9 : memref<!tpu.dma_semaphore, #tpu.memory_space<semaphore_mem>>) src(%177 : memref<1x32xf32, #tpu.memory_space<any>>) dst(%178 : memref<1x32xf32, #tpu.memory_space<vmem>>)
    %c0_i32_158 = arith.constant 0 : i32
    %179 = tpu.memref_slice %arg4[%106, %c0_i32_158] : memref<31x32xf32, #tpu.memory_space<any>> -> memref<1x32xf32, #tpu.memory_space<any>>
    %c5_i32_159 = arith.constant 5 : i32
    %c0_i32_160 = arith.constant 0 : i32
    %180 = tpu.memref_slice %arg8[%c5_i32_159, %c0_i32_160] : memref<8x32xf32, #tpu.memory_space<vmem>> -> memref<1x32xf32, #tpu.memory_space<vmem>>
    tpu.wait_dma2 semaphore(%arg9 : memref<!tpu.dma_semaphore, #tpu.memory_space<semaphore_mem>>) src(%179 : memref<1x32xf32, #tpu.memory_space<any>>) dst(%180 : memref<1x32xf32, #tpu.memory_space<vmem>>)
    %c0_i32_161 = arith.constant 0 : i32
    %181 = tpu.memref_slice %arg2[%112, %c0_i32_161] : memref<11x32xf32, #tpu.memory_space<any>> -> memref<1x32xf32, #tpu.memory_space<any>>
    %c6_i32_162 = arith.constant 6 : i32
    %c0_i32_163 = arith.constant 0 : i32
    %182 = tpu.memref_slice %arg6[%c6_i32_162, %c0_i32_163] : memref<8x32xf32, #tpu.memory_space<vmem>> -> memref<1x32xf32, #tpu.memory_space<vmem>>
    tpu.wait_dma2 semaphore(%arg9 : memref<!tpu.dma_semaphore, #tpu.memory_space<semaphore_mem>>) src(%181 : memref<1x32xf32, #tpu.memory_space<any>>) dst(%182 : memref<1x32xf32, #tpu.memory_space<vmem>>)
    %c0_i32_164 = arith.constant 0 : i32
    %183 = tpu.memref_slice %arg3[%118, %c0_i32_164] : memref<21x32xf32, #tpu.memory_space<any>> -> memref<1x32xf32, #tpu.memory_space<any>>
    %c6_i32_165 = arith.constant 6 : i32
    %c0_i32_166 = arith.constant 0 : i32
    %184 = tpu.memref_slice %arg7[%c6_i32_165, %c0_i32_166] : memref<8x32xf32, #tpu.memory_space<vmem>> -> memref<1x32xf32, #tpu.memory_space<vmem>>
    tpu.wait_dma2 semaphore(%arg9 : memref<!tpu.dma_semaphore, #tpu.memory_space<semaphore_mem>>) src(%183 : memref<1x32xf32, #tpu.memory_space<any>>) dst(%184 : memref<1x32xf32, #tpu.memory_space<vmem>>)
    %c0_i32_167 = arith.constant 0 : i32
    %185 = tpu.memref_slice %arg4[%124, %c0_i32_167] : memref<31x32xf32, #tpu.memory_space<any>> -> memref<1x32xf32, #tpu.memory_space<any>>
    %c6_i32_168 = arith.constant 6 : i32
    %c0_i32_169 = arith.constant 0 : i32
    %186 = tpu.memref_slice %arg8[%c6_i32_168, %c0_i32_169] : memref<8x32xf32, #tpu.memory_space<vmem>> -> memref<1x32xf32, #tpu.memory_space<vmem>>
    tpu.wait_dma2 semaphore(%arg9 : memref<!tpu.dma_semaphore, #tpu.memory_space<semaphore_mem>>) src(%185 : memref<1x32xf32, #tpu.memory_space<any>>) dst(%186 : memref<1x32xf32, #tpu.memory_space<vmem>>)
    %c0_i32_170 = arith.constant 0 : i32
    %187 = tpu.memref_slice %arg2[%130, %c0_i32_170] : memref<11x32xf32, #tpu.memory_space<any>> -> memref<1x32xf32, #tpu.memory_space<any>>
    %c7_i32_171 = arith.constant 7 : i32
    %c0_i32_172 = arith.constant 0 : i32
    %188 = tpu.memref_slice %arg6[%c7_i32_171, %c0_i32_172] : memref<8x32xf32, #tpu.memory_space<vmem>> -> memref<1x32xf32, #tpu.memory_space<vmem>>
    tpu.wait_dma2 semaphore(%arg9 : memref<!tpu.dma_semaphore, #tpu.memory_space<semaphore_mem>>) src(%187 : memref<1x32xf32, #tpu.memory_space<any>>) dst(%188 : memref<1x32xf32, #tpu.memory_space<vmem>>)
    %c0_i32_173 = arith.constant 0 : i32
    %189 = tpu.memref_slice %arg3[%136, %c0_i32_173] : memref<21x32xf32, #tpu.memory_space<any>> -> memref<1x32xf32, #tpu.memory_space<any>>
    %c7_i32_174 = arith.constant 7 : i32
    %c0_i32_175 = arith.constant 0 : i32
    %190 = tpu.memref_slice %arg7[%c7_i32_174, %c0_i32_175] : memref<8x32xf32, #tpu.memory_space<vmem>> -> memref<1x32xf32, #tpu.memory_space<vmem>>
    tpu.wait_dma2 semaphore(%arg9 : memref<!tpu.dma_semaphore, #tpu.memory_space<semaphore_mem>>) src(%189 : memref<1x32xf32, #tpu.memory_space<any>>) dst(%190 : memref<1x32xf32, #tpu.memory_space<vmem>>)
    %c0_i32_176 = arith.constant 0 : i32
    %191 = tpu.memref_slice %arg4[%142, %c0_i32_176] : memref<31x32xf32, #tpu.memory_space<any>> -> memref<1x32xf32, #tpu.memory_space<any>>
    %c7_i32_177 = arith.constant 7 : i32
    %c0_i32_178 = arith.constant 0 : i32
    %192 = tpu.memref_slice %arg8[%c7_i32_177, %c0_i32_178] : memref<8x32xf32, #tpu.memory_space<vmem>> -> memref<1x32xf32, #tpu.memory_space<vmem>>
    tpu.wait_dma2 semaphore(%arg9 : memref<!tpu.dma_semaphore, #tpu.memory_space<semaphore_mem>>) src(%191 : memref<1x32xf32, #tpu.memory_space<any>>) dst(%192 : memref<1x32xf32, #tpu.memory_space<vmem>>)
    %c0 = arith.constant 0 : index
    %c0_179 = arith.constant 0 : index
    %193 = vector.load %arg6[%c0, %c0_179] : memref<8x32xf32, #tpu.memory_space<vmem>>, vector<8x32xf32>
    %c0_180 = arith.constant 0 : index
    %c0_181 = arith.constant 0 : index
    %194 = vector.load %arg5[%c0_180, %c0_181] : memref<8x96xf32, #tpu.memory_space<vmem>>, vector<8x32xf32>
    tpu.vector_store %arg5[%c0_180, %c0_181], %193 {strides = array<i32>} : memref<8x96xf32, #tpu.memory_space<vmem>>, vector<8x32xf32>,
    %c0_182 = arith.constant 0 : index
    %c0_183 = arith.constant 0 : index
    %195 = vector.load %arg7[%c0_182, %c0_183] : memref<8x32xf32, #tpu.memory_space<vmem>>, vector<8x32xf32>
    %c0_184 = arith.constant 0 : index
    %c32 = arith.constant 32 : index
    %196 = vector.load %arg5[%c0_184, %c32] : memref<8x96xf32, #tpu.memory_space<vmem>>, vector<8x32xf32>
    tpu.vector_store %arg5[%c0_184, %c32], %195 {strides = array<i32>} : memref<8x96xf32, #tpu.memory_space<vmem>>, vector<8x32xf32>,
    %c0_185 = arith.constant 0 : index
    %c0_186 = arith.constant 0 : index
    %197 = vector.load %arg8[%c0_185, %c0_186] : memref<8x32xf32, #tpu.memory_space<vmem>>, vector<8x32xf32>
    %c0_187 = arith.constant 0 : index
    %c64 = arith.constant 64 : index
    %198 = vector.load %arg5[%c0_187, %c64] : memref<8x96xf32, #tpu.memory_space<vmem>>, vector<8x32xf32>
    tpu.vector_store %arg5[%c0_187, %c64], %197 {strides = array<i32>} : memref<8x96xf32, #tpu.memory_space<vmem>>, vector<8x32xf32>,
    return
  }
  func.func @transform_3(%arg0: i32, %arg1: memref<24xi32, #tpu.memory_space<smem>>) -> (i32, i32) {
    %c0_i32 = arith.constant 0 : i32
    %c0_i32_0 = arith.constant 0 : i32
    return %arg0, %c0_i32 : i32, i32
  }
}

</mosaic_0001>

<bundles_post_ra>
// kernel: tpu_custom_call.1
= control target key start
LH: loop header
LB: loop body
LE: loop exit
PB: predicated region body
PF: predicated region fallthrough
CT: control target
= control target key end

     0   :  { %s1167_s15 = smov [#allocation7]   ;;  %s1589_s0 = inlined_call_operand.hbm [shape: s32[24], index: 0, kind: input, shape index: {}]   ;;  %s1590_s1 = inlined_call_operand.hbm [shape: f32[11,32], index: 1, kind: input, shape index: {}]   ;;  %s1591_s2 = inlined_call_operand.hbm [shape: f32[21,32], index: 2, kind: input, shape index: {}]   ;;  %s1592_s3 = inlined_call_operand.hbm [shape: f32[31,32], index: 3, kind: input, shape index: {}]   ;;  %s1593_s4 = inlined_call_operand.hbm [shape: f32[8,96], index: 4, kind: output, shape index: {}]  }
   0x1   :  { %10 = dma.hbm_to_smem %s1589_s0, 16, %s1167_s15, [#allocation6] }
   0x2   :  { %1161 = dma.done.wait [#allocation6], 16 }
   0x3   :  { %1162 = vsyncadd [#allocation6], 4294967280 }
   0x4   :  { %12 = sfence }
   0x5   :  { %13 = vsyncpa [#allocation9], 0  ;;  %s15_s18 = sld [smem:[#allocation7]]  ;;  %s1168_s19 = smov [#allocation2]  }
   0x6   :  { %s25_s20 = sshll.u32 %s1168_s19, 4  ;;  %s1223_s21 = sld [smem:[#allocation7 + $0x1]]  ;;  %s1225_s20 = int_to_ptr.vmem [resolvable:$true] %s25_s20 }
   0x7   :  { %s1169_s22 = smov [#allocation3]   ;;  %s1227_s24 = sld [smem:[#allocation7 + $0x2]] }
   0x8   :  { %s40_s23 = sshll.u32 %s1169_s22, 4  ;;  %s1170_s25 = smov [#allocation4]   ;;  %s1229_s23 = int_to_ptr.vmem [resolvable:$true] %s40_s23 }
   0x9   :  { %s55_s0 = sshll.u32 %s1170_s25, 4  ;;  %s1231_s26 = sld [smem:[#allocation7 + $0x3]]  ;;  %s1233_s0 = int_to_ptr.vmem [resolvable:$true] %s55_s0 }
   0xa   :  { %s1242_s9 = scalar_lea.hbm %s1590_s1, 256 }
   0xb   :  { %s529_s27 = sshll.u32 %s15_s18, 4 }
   0xc   :  { %s17_s30 = scalar_lea.hbm %s1590_s1, %s529_s27  ;;  %s531_s5 = sshll.u32 %s1223_s21, 4 }
   0xd   :  { %s613_s6 = scalar_lea.hbm %s17_s30, 16  ;;  %p616_p1 = scmp.lt.s32.totalorder %s17_s30, %s1590_s1 }
   0xe   :  { %p614_p0 = scmp.ne.s32.totalorder %s17_s30, %s613_s6  ;;  %p617_p2 = scmp.lt.s32.totalorder %s1242_s9, %s613_s6 }
  0x10   :  { %p618_p3 = por %p617_p2, %p616_p1 }
  0x12   :  { %p619_p4 = pnand %p618_p3, %p614_p0 }
  0x14   :  { %622 = shalt.err (!%p619_p4)  }
  0x15   :  { %s623_s12 = scalar_lea.vmem %s1225_s20, 16  ;;  %s1251_s13 = scalar_lea.vmem %s1225_s20, 128 }
  0x16   :  { %p624_p5 = scmp.ne.s32.totalorder %s1225_s20, %s623_s12  ;;  %p628_p6 = scmp.lt.s32.totalorder %s1225_s20, %s1225_s20 }
  0x17   :  { %p629_p7 = scmp.lt.s32.totalorder %s1251_s13, %s623_s12 }
  0x19   :  { %p630_p8 = por %p629_p7, %p628_p6 }
  0x1b   :  { %p631_p9 = pnand %p630_p8, %p624_p5 }
  0x1d   :  { %634 = shalt.err (!%p631_p9)  }
  0x1e   :  { %28 = dma.hbm_to_vmem [thread:$0]  %s17_s30, 16, %s1225_s20, [#allocation5] }
  0x1f   :  { %s32_s16 = scalar_lea.hbm %s1591_s2, %s531_s5  ;;  %s533_s17 = sshll.u32 %s1227_s24, 4 }
  0x20   :  { %s635_s18 = scalar_lea.hbm %s32_s16, 16  ;;  %s1264_s22 = scalar_lea.hbm %s1591_s2, 384 }
  0x21   :  { %p636_p10 = scmp.ne.s32.totalorder %s32_s16, %s635_s18  ;;  %p638_p11 = scmp.lt.s32.totalorder %s32_s16, %s1591_s2 }
  0x22   :  { %p639_p12 = scmp.lt.s32.totalorder %s1264_s22, %s635_s18 }
  0x24   :  { %p640_p13 = por %p639_p12, %p638_p11 }
  0x26   :  { %p641_p0 = pnand %p640_p13, %p636_p10 }
  0x28   :  { %644 = shalt.err (!%p641_p0)  }
  0x29   :  { %s645_s24 = scalar_lea.vmem %s1229_s23, 16  ;;  %s1273_s28 = scalar_lea.vmem %s1229_s23, 128 }
  0x2a   :  { %p646_p1 = scmp.ne.s32.totalorder %s1229_s23, %s645_s24  ;;  %p650_p2 = scmp.lt.s32.totalorder %s1229_s23, %s1229_s23 }
  0x2b   :  { %p651_p3 = scmp.lt.s32.totalorder %s1273_s28, %s645_s24 }
  0x2d   :  { %p652_p4 = por %p651_p3, %p650_p2 }
  0x2f   :  { %p653_p5 = pnand %p652_p4, %p646_p1 }
  0x31   :  { %656 = shalt.err (!%p653_p5)  }
  0x32   :  { %43 = dma.hbm_to_vmem [thread:$0]  %s32_s16, 16, %s1229_s23, [#allocation5] }
  0x33   :  { %s47_s5 = scalar_lea.hbm %s1592_s3, %s533_s17  ;;  %s535_s6 = sshll.u32 %s1231_s26, 4 }
  0x34   :  { %s657_s7 = scalar_lea.hbm %s47_s5, 16  ;;  %s1286_s11 = scalar_lea.hbm %s1592_s3, 512 }
  0x35   :  { %p658_p6 = scmp.ne.s32.totalorder %s47_s5, %s657_s7  ;;  %p660_p7 = scmp.lt.s32.totalorder %s47_s5, %s1592_s3 }
  0x36   :  { %p661_p8 = scmp.lt.s32.totalorder %s1286_s11, %s657_s7 }
  0x38   :  { %p662_p9 = por %p661_p8, %p660_p7 }
  0x3a   :  { %p663_p10 = pnand %p662_p9, %p658_p6 }
  0x3c   :  { %666 = shalt.err (!%p663_p10)  }
  0x3d   :  { %s667_s26 = scalar_lea.vmem %s1233_s0, 16  ;;  %s1295_s15 = scalar_lea.vmem %s1233_s0, 128 }
  0x3e   :  { %p668_p11 = scmp.ne.s32.totalorder %s1233_s0, %s667_s26  ;;  %p672_p12 = scmp.lt.s32.totalorder %s1233_s0, %s1233_s0 }
  0x3f   :  { %p673_p13 = scmp.lt.s32.totalorder %s1295_s15, %s667_s26 }
  0x41   :  { %p674_p0 = por %p673_p13, %p672_p12 }
  0x43   :  { %p675_p1 = pnand %p674_p0, %p668_p11 }
  0x45   :  { %678 = shalt.err (!%p675_p1)  }
  0x46   :  { %58 = dma.hbm_to_vmem [thread:$0]  %s47_s5, 16, %s1233_s0, [#allocation5] }
  0x47   :  { %s62_s18 = scalar_lea.hbm %s1590_s1, %s535_s6  ;;  %s1171_s19 = smov [#allocation2 + $0x1]  }
  0x48   :  { %s71_s21 = sshll.u32 %s1171_s19, 4  ;;  %s536_s25 = sld [smem:[#allocation7 + $0x4]]  ;;  %s72_s21 = int_to_ptr.vmem [resolvable:$true] %s71_s21 }
  0x49   :  { %s679_s27 = scalar_lea.hbm %s62_s18, 16  ;;  %p682_p3 = scmp.lt.s32.totalorder %s62_s18, %s1590_s1 }
  0x4a   :  { %p680_p2 = scmp.ne.s32.totalorder %s62_s18, %s679_s27  ;;  %p683_p4 = scmp.lt.s32.totalorder %s1242_s9, %s679_s27 }
  0x4c   :  { %p684_p5 = por %p683_p4, %p682_p3 }
  0x4e   :  { %p685_p6 = pnand %p684_p5, %p680_p2 }
  0x50   :  { %688 = shalt.err (!%p685_p6)  }
  0x51   :  { %s689_s30 = scalar_lea.vmem %s72_s21, 16  ;;  %p694_p8 = scmp.lt.s32.totalorder %s72_s21, %s1225_s20 }
  0x52   :  { %p690_p7 = scmp.ne.s32.totalorder %s72_s21, %s689_s30  ;;  %p695_p9 = scmp.lt.s32.totalorder %s1251_s13, %s689_s30 }
  0x54   :  { %p696_p10 = por %p695_p9, %p694_p8 }
  0x56   :  { %p697_p11 = pnand %p696_p10, %p690_p7 }
  0x58   :  { %700 = shalt.err (!%p697_p11)  }
  0x59   :  { %74 = dma.hbm_to_vmem [thread:$0]  %s62_s18, 16, %s72_s21, [#allocation5] }
  0x5a   :  { %s1172_s5 = smov [#allocation3 + $0x1]   ;;  %s538_s7 = sld [smem:[#allocation7 + $0x5]] }
  0x5b   :  { %s87_s6 = sshll.u32 %s1172_s5, 4  ;;  %s1173_s8 = smov [#allocation4 + $0x1]   ;;  %s88_s6 = int_to_ptr.vmem [resolvable:$true] %s87_s6 }
  0x5c   :  { %s103_s10 = sshll.u32 %s1173_s8, 4  ;;  %s1310_s12 = sld [smem:[#allocation7 + $0x6]]  ;;  %s1312_s10 = int_to_ptr.vmem [resolvable:$true] %s103_s10 }
  0x5d   :  { %s537_s14 = sshll.u32 %s536_s25, 4 }
  0x5e   :  { %s78_s17 = scalar_lea.hbm %s1591_s2, %s537_s14 }
  0x5f   :  { %s701_s19 = scalar_lea.hbm %s78_s17, 16  ;;  %p704_p13 = scmp.lt.s32.totalorder %s78_s17, %s1591_s2 }
  0x60   :  { %p702_p12 = scmp.ne.s32.totalorder %s78_s17, %s701_s19  ;;  %p705_p0 = scmp.lt.s32.totalorder %s1264_s22, %s701_s19 }
  0x62   :  { %p706_p1 = por %p705_p0, %p704_p13 }
  0x64   :  { %p707_p2 = pnand %p706_p1, %p702_p12 }
  0x66   :  { %710 = shalt.err (!%p707_p2)  }
  0x67   :  { %s711_s21 = scalar_lea.vmem %s88_s6, 16  ;;  %p716_p4 = scmp.lt.s32.totalorder %s88_s6, %s1229_s23 }
  0x68   :  { %p712_p3 = scmp.ne.s32.totalorder %s88_s6, %s711_s21  ;;  %p717_p5 = scmp.lt.s32.totalorder %s1273_s28, %s711_s21 }
  0x6a   :  { %p718_p6 = por %p717_p5, %p716_p4 }
  0x6c   :  { %p719_p7 = pnand %p718_p6, %p712_p3 }
  0x6e   :  { %722 = shalt.err (!%p719_p7)  }
  0x6f   :  { %90 = dma.hbm_to_vmem [thread:$0]  %s78_s17, 16, %s88_s6, [#allocation5] }
  0x70   :  { %s539_s25 = sshll.u32 %s538_s7, 4  ;;  %s1174_s24 = smov [#allocation2 + $0x2]  }
  0x71   :  { %s119_s29 = sshll.u32 %s1174_s24, 4  ;;  %s94_s8 = scalar_lea.hbm %s1592_s3, %s539_s25  ;;  %s1326_s29 = int_to_ptr.vmem [resolvable:$true] %s119_s29 }
  0x72   :  { %s723_s14 = scalar_lea.hbm %s94_s8, 16  ;;  %p726_p9 = scmp.lt.s32.totalorder %s94_s8, %s1592_s3 }
  0x73   :  { %p724_p8 = scmp.ne.s32.totalorder %s94_s8, %s723_s14  ;;  %p727_p10 = scmp.lt.s32.totalorder %s1286_s11, %s723_s14 }
  0x75   :  { %p728_p11 = por %p727_p10, %p726_p9 }
  0x77   :  { %p729_p12 = pnand %p728_p11, %p724_p8 }
  0x79   :  { %732 = shalt.err (!%p729_p12)  }
  0x7a   :  { %s733_s6 = scalar_lea.vmem %s1312_s10, 16  ;;  %p738_p0 = scmp.lt.s32.totalorder %s1312_s10, %s1233_s0 }
  0x7b   :  { %p734_p13 = scmp.ne.s32.totalorder %s1312_s10, %s733_s6  ;;  %p739_p1 = scmp.lt.s32.totalorder %s1295_s15, %s733_s6 }
  0x7d   :  { %p740_p2 = por %p739_p1, %p738_p0 }
  0x7f   :  { %p741_p3 = pnand %p740_p2, %p734_p13 }
  0x81   :  { %744 = shalt.err (!%p741_p3)  }
  0x82   :  { %106 = dma.hbm_to_vmem [thread:$0]  %s94_s8, 16, %s1312_s10, [#allocation5] }
  0x83   :  { %s541_s7 = sshll.u32 %s1310_s12, 4  ;;  %s542_s17 = sld [smem:[#allocation7 + $0x7]] }
  0x84   :  { %s110_s18 = scalar_lea.hbm %s1590_s1, %s541_s7 }
  0x85   :  { %s745_s21 = scalar_lea.hbm %s110_s18, 16  ;;  %p748_p5 = scmp.lt.s32.totalorder %s110_s18, %s1590_s1 }
  0x86   :  { %p746_p4 = scmp.ne.s32.totalorder %s110_s18, %s745_s21  ;;  %p749_p6 = scmp.lt.s32.totalorder %s1242_s9, %s745_s21 }
  0x88   :  { %p750_p7 = por %p749_p6, %p748_p5 }
  0x8a   :  { %p751_p8 = pnand %p750_p7, %p746_p4 }
  0x8c   :  { %754 = shalt.err (!%p751_p8)  }
  0x8d   :  { %s755_s10 = scalar_lea.vmem %s1326_s29, 16  ;;  %p760_p10 = scmp.lt.s32.totalorder %s1326_s29, %s1225_s20 }
  0x8e   :  { %p756_p9 = scmp.ne.s32.totalorder %s1326_s29, %s755_s10  ;;  %p761_p11 = scmp.lt.s32.totalorder %s1251_s13, %s755_s10 }
  0x90   :  { %p762_p12 = por %p761_p11, %p760_p10 }
  0x92   :  { %p763_p13 = pnand %p762_p12, %p756_p9 }
  0x94   :  { %766 = shalt.err (!%p763_p13)  }
  0x95   :  { %122 = dma.hbm_to_vmem [thread:$0]  %s110_s18, 16, %s1326_s29, [#allocation5] }
  0x96   :  { %s1175_s12 = smov [#allocation3 + $0x2]   ;;  %s544_s5 = sld [smem:[#allocation7 + $0x8]] }
  0x97   :  { %s135_s30 = sshll.u32 %s1175_s12, 4  ;;  %s1176_s8 = smov [#allocation4 + $0x2]   ;;  %s136_s30 = int_to_ptr.vmem [resolvable:$true] %s135_s30 }
  0x98   :  { %s151_s14 = sshll.u32 %s1176_s8, 4  ;;  %s1352_s26 = sld [smem:[#allocation7 + $0x9]]  ;;  %s1354_s14 = int_to_ptr.vmem [resolvable:$true] %s151_s14 }
  0x99   :  { %s543_s16 = sshll.u32 %s542_s17, 4 }
  0x9a   :  { %s126_s19 = scalar_lea.hbm %s1591_s2, %s543_s16 }
  0x9b   :  { %s767_s27 = scalar_lea.hbm %s126_s19, 16  ;;  %p770_p1 = scmp.lt.s32.totalorder %s126_s19, %s1591_s2 }
  0x9c   :  { %p768_p0 = scmp.ne.s32.totalorder %s126_s19, %s767_s27  ;;  %p771_p2 = scmp.lt.s32.totalorder %s1264_s22, %s767_s27 }
  0x9e   :  { %p772_p3 = por %p771_p2, %p770_p1 }
  0xa0   :  { %p773_p4 = pnand %p772_p3, %p768_p0 }
  0xa2   :  { %776 = shalt.err (!%p773_p4)  }
  0xa3   :  { %s777_s29 = scalar_lea.vmem %s136_s30, 16  ;;  %p782_p6 = scmp.lt.s32.totalorder %s136_s30, %s1229_s23 }
  0xa4   :  { %p778_p5 = scmp.ne.s32.totalorder %s136_s30, %s777_s29  ;;  %p783_p7 = scmp.lt.s32.totalorder %s1273_s28, %s777_s29 }
  0xa6   :  { %p784_p8 = por %p783_p7, %p782_p6 }
  0xa8   :  { %p785_p9 = pnand %p784_p8, %p778_p5 }
  0xaa   :  { %788 = shalt.err (!%p785_p9)  }
  0xab   :  { %138 = dma.hbm_to_vmem [thread:$0]  %s126_s19, 16, %s136_s30, [#allocation5] }
  0xac   :  { %s545_s17 = sshll.u32 %s544_s5, 4  ;;  %s1177_s18 = smov [#allocation2 + $0x3]  }
  0xad   :  { %s167_s24 = sshll.u32 %s1177_s18, 4  ;;  %s142_s8 = scalar_lea.hbm %s1592_s3, %s545_s17  ;;  %s1368_s24 = int_to_ptr.vmem [resolvable:$true] %s167_s24 }
  0xae   :  { %s789_s16 = scalar_lea.hbm %s142_s8, 16  ;;  %p792_p11 = scmp.lt.s32.totalorder %s142_s8, %s1592_s3 }
  0xaf   :  { %p790_p10 = scmp.ne.s32.totalorder %s142_s8, %s789_s16  ;;  %p793_p12 = scmp.lt.s32.totalorder %s1286_s11, %s789_s16 }
  0xb1   :  { %p794_p13 = por %p793_p12, %p792_p11 }
  0xb3   :  { %p795_p0 = pnand %p794_p13, %p790_p10 }
  0xb5   :  { %798 = shalt.err (!%p795_p0)  }
  0xb6   :  { %s799_s30 = scalar_lea.vmem %s1354_s14, 16  ;;  %p804_p2 = scmp.lt.s32.totalorder %s1354_s14, %s1233_s0 }
  0xb7   :  { %p800_p1 = scmp.ne.s32.totalorder %s1354_s14, %s799_s30  ;;  %p805_p3 = scmp.lt.s32.totalorder %s1295_s15, %s799_s30 }
  0xb9   :  { %p806_p4 = por %p805_p3, %p804_p2 }
  0xbb   :  { %p807_p5 = pnand %p806_p4, %p800_p1 }
  0xbd   :  { %810 = shalt.err (!%p807_p5)  }
  0xbe   :  { %154 = dma.hbm_to_vmem [thread:$0]  %s142_s8, 16, %s1354_s14, [#allocation5] }
  0xbf   :  { %s547_s5 = sshll.u32 %s1352_s26, 4  ;;  %s548_s19 = sld [smem:[#allocation7 + $0xa]] }
  0xc0   :  { %s158_s25 = scalar_lea.hbm %s1590_s1, %s547_s5 }
  0xc1   :  { %s811_s29 = scalar_lea.hbm %s158_s25, 16  ;;  %p814_p7 = scmp.lt.s32.totalorder %s158_s25, %s1590_s1 }
  0xc2   :  { %p812_p6 = scmp.ne.s32.totalorder %s158_s25, %s811_s29  ;;  %p815_p8 = scmp.lt.s32.totalorder %s1242_s9, %s811_s29 }
  0xc4   :  { %p816_p9 = por %p815_p8, %p814_p7 }
  0xc6   :  { %p817_p10 = pnand %p816_p9, %p812_p6 }
  0xc8   :  { %820 = shalt.err (!%p817_p10)  }
  0xc9   :  { %s821_s14 = scalar_lea.vmem %s1368_s24, 16  ;;  %p826_p12 = scmp.lt.s32.totalorder %s1368_s24, %s1225_s20 }
  0xca   :  { %p822_p11 = scmp.ne.s32.totalorder %s1368_s24, %s821_s14  ;;  %p827_p13 = scmp.lt.s32.totalorder %s1251_s13, %s821_s14 }
  0xcc   :  { %p828_p0 = por %p827_p13, %p826_p12 }
  0xce   :  { %p829_p1 = pnand %p828_p0, %p822_p11 }
  0xd0   :  { %832 = shalt.err (!%p829_p1)  }
  0xd1   :  { %170 = dma.hbm_to_vmem [thread:$0]  %s158_s25, 16, %s1368_s24, [#allocation5] }
  0xd2   :  { %s1178_s26 = smov [#allocation3 + $0x3]   ;;  %s550_s12 = sld [smem:[#allocation7 + $0xb]] }
  0xd3   :  { %s183_s10 = sshll.u32 %s1178_s26, 4  ;;  %s1179_s8 = smov [#allocation4 + $0x3]   ;;  %s184_s10 = int_to_ptr.vmem [resolvable:$true] %s183_s10 }
  0xd4   :  { %s199_s16 = sshll.u32 %s1179_s8, 4  ;;  %s1394_s6 = sld [smem:[#allocation7 + $0xc]]  ;;  %s1396_s16 = int_to_ptr.vmem [resolvable:$true] %s199_s16 }
  0xd5   :  { %s549_s7 = sshll.u32 %s548_s19, 4 }
  0xd6   :  { %s174_s27 = scalar_lea.hbm %s1591_s2, %s549_s7 }
  0xd7   :  { %s833_s21 = scalar_lea.hbm %s174_s27, 16  ;;  %p836_p3 = scmp.lt.s32.totalorder %s174_s27, %s1591_s2 }
  0xd8   :  { %p834_p2 = scmp.ne.s32.totalorder %s174_s27, %s833_s21  ;;  %p837_p4 = scmp.lt.s32.totalorder %s1264_s22, %s833_s21 }
  0xda   :  { %p838_p5 = por %p837_p4, %p836_p3 }
  0xdc   :  { %p839_p6 = pnand %p838_p5, %p834_p2 }
  0xde   :  { %842 = shalt.err (!%p839_p6)  }
  0xdf   :  { %s843_s24 = scalar_lea.vmem %s184_s10, 16  ;;  %p848_p8 = scmp.lt.s32.totalorder %s184_s10, %s1229_s23 }
  0xe0   :  { %p844_p7 = scmp.ne.s32.totalorder %s184_s10, %s843_s24  ;;  %p849_p9 = scmp.lt.s32.totalorder %s1273_s28, %s843_s24 }
  0xe2   :  { %p850_p10 = por %p849_p9, %p848_p8 }
  0xe4   :  { %p851_p11 = pnand %p850_p10, %p844_p7 }
  0xe6   :  { %854 = shalt.err (!%p851_p11)  }
  0xe7   :  { %186 = dma.hbm_to_vmem [thread:$0]  %s174_s27, 16, %s184_s10, [#allocation5] }
  0xe8   :  { %s551_s19 = sshll.u32 %s550_s12, 4  ;;  %s1180_s25 = smov [#allocation2 + $0x4]  }
  0xe9   :  { %s215_s18 = sshll.u32 %s1180_s25, 4  ;;  %s190_s8 = scalar_lea.hbm %s1592_s3, %s551_s19  ;;  %s1410_s18 = int_to_ptr.vmem [resolvable:$true] %s215_s18 }
  0xea   :  { %s855_s7 = scalar_lea.hbm %s190_s8, 16  ;;  %p858_p13 = scmp.lt.s32.totalorder %s190_s8, %s1592_s3 }
  0xeb   :  { %p856_p12 = scmp.ne.s32.totalorder %s190_s8, %s855_s7  ;;  %p859_p0 = scmp.lt.s32.totalorder %s1286_s11, %s855_s7 }
  0xed   :  { %p860_p1 = por %p859_p0, %p858_p13 }
  0xef   :  { %p861_p2 = pnand %p860_p1, %p856_p12 }
  0xf1   :  { %864 = shalt.err (!%p861_p2)  }
  0xf2   :  { %s865_s10 = scalar_lea.vmem %s1396_s16, 16  ;;  %p870_p4 = scmp.lt.s32.totalorder %s1396_s16, %s1233_s0 }
  0xf3   :  { %p866_p3 = scmp.ne.s32.totalorder %s1396_s16, %s865_s10  ;;  %p871_p5 = scmp.lt.s32.totalorder %s1295_s15, %s865_s10 }
  0xf5   :  { %p872_p6 = por %p871_p5, %p870_p4 }
  0xf7   :  { %p873_p7 = pnand %p872_p6, %p866_p3 }
  0xf9   :  { %876 = shalt.err (!%p873_p7)  }
  0xfa   :  { %202 = dma.hbm_to_vmem [thread:$0]  %s190_s8, 16, %s1396_s16, [#allocation5] }
  0xfb   :  { %s553_s12 = sshll.u32 %s1394_s6, 4  ;;  %s554_s27 = sld [smem:[#allocation7 + $0xd]] }
  0xfc   :  { %s206_s17 = scalar_lea.hbm %s1590_s1, %s553_s12 }
  0xfd   :  { %s877_s24 = scalar_lea.hbm %s206_s17, 16  ;;  %p880_p9 = scmp.lt.s32.totalorder %s206_s17, %s1590_s1 }
  0xfe   :  { %p878_p8 = scmp.ne.s32.totalorder %s206_s17, %s877_s24  ;;  %p881_p10 = scmp.lt.s32.totalorder %s1242_s9, %s877_s24 }
 0x100   :  { %p882_p11 = por %p881_p10, %p880_p9 }
 0x102   :  { %p883_p12 = pnand %p882_p11, %p878_p8 }
 0x104   :  { %886 = shalt.err (!%p883_p12)  }
 0x105   :  { %s887_s16 = scalar_lea.vmem %s1410_s18, 16  ;;  %p892_p0 = scmp.lt.s32.totalorder %s1410_s18, %s1225_s20 }
 0x106   :  { %p888_p13 = scmp.ne.s32.totalorder %s1410_s18, %s887_s16  ;;  %p893_p1 = scmp.lt.s32.totalorder %s1251_s13, %s887_s16 }
 0x108   :  { %p894_p2 = por %p893_p1, %p892_p0 }
 0x10a   :  { %p895_p3 = pnand %p894_p2, %p888_p13 }
 0x10c   :  { %898 = shalt.err (!%p895_p3)  }
 0x10d   :  { %218 = dma.hbm_to_vmem [thread:$0]  %s206_s17, 16, %s1410_s18, [#allocation5] }
 0x10e   :  { %s1181_s6 = smov [#allocation3 + $0x4]   ;;  %s556_s26 = sld [smem:[#allocation7 + $0xe]] }
 0x10f   :  { %s231_s14 = sshll.u32 %s1181_s6, 4  ;;  %s1182_s8 = smov [#allocation4 + $0x4]   ;;  %s232_s14 = int_to_ptr.vmem [resolvable:$true] %s231_s14 }
 0x110   :  { %s247_s7 = sshll.u32 %s1182_s8, 4  ;;  %s1436_s30 = sld [smem:[#allocation7 + $0xf]]  ;;  %s1438_s7 = int_to_ptr.vmem [resolvable:$true] %s247_s7 }
 0x111   :  { %s555_s5 = sshll.u32 %s554_s27, 4 }
 0x112   :  { %s222_s21 = scalar_lea.hbm %s1591_s2, %s555_s5 }
 0x113   :  { %s899_s29 = scalar_lea.hbm %s222_s21, 16  ;;  %p902_p5 = scmp.lt.s32.totalorder %s222_s21, %s1591_s2 }
 0x114   :  { %p900_p4 = scmp.ne.s32.totalorder %s222_s21, %s899_s29  ;;  %p903_p6 = scmp.lt.s32.totalorder %s1264_s22, %s899_s29 }
 0x116   :  { %p904_p7 = por %p903_p6, %p902_p5 }
 0x118   :  { %p905_p8 = pnand %p904_p7, %p900_p4 }
 0x11a   :  { %908 = shalt.err (!%p905_p8)  }
 0x11b   :  { %s909_s18 = scalar_lea.vmem %s232_s14, 16  ;;  %p914_p10 = scmp.lt.s32.totalorder %s232_s14, %s1229_s23 }
 0x11c   :  { %p910_p9 = scmp.ne.s32.totalorder %s232_s14, %s909_s18  ;;  %p915_p11 = scmp.lt.s32.totalorder %s1273_s28, %s909_s18 }
 0x11e   :  { %p916_p12 = por %p915_p11, %p914_p10 }
 0x120   :  { %p917_p13 = pnand %p916_p12, %p910_p9 }
 0x122   :  { %920 = shalt.err (!%p917_p13)  }
 0x123   :  { %234 = dma.hbm_to_vmem [thread:$0]  %s222_s21, 16, %s232_s14, [#allocation5] }
 0x124   :  { %s557_s27 = sshll.u32 %s556_s26, 4  ;;  %s1183_s17 = smov [#allocation2 + $0x5]  }
 0x125   :  { %s263_s25 = sshll.u32 %s1183_s17, 4  ;;  %s238_s8 = scalar_lea.hbm %s1592_s3, %s557_s27  ;;  %s1452_s25 = int_to_ptr.vmem [resolvable:$true] %s263_s25 }
 0x126   :  { %s921_s5 = scalar_lea.hbm %s238_s8, 16  ;;  %p924_p1 = scmp.lt.s32.totalorder %s238_s8, %s1592_s3 }
 0x127   :  { %p922_p0 = scmp.ne.s32.totalorder %s238_s8, %s921_s5  ;;  %p925_p2 = scmp.lt.s32.totalorder %s1286_s11, %s921_s5 }
 0x129   :  { %p926_p3 = por %p925_p2, %p924_p1 }
 0x12b   :  { %p927_p4 = pnand %p926_p3, %p922_p0 }
 0x12d   :  { %930 = shalt.err (!%p927_p4)  }
 0x12e   :  { %s931_s14 = scalar_lea.vmem %s1438_s7, 16  ;;  %p936_p6 = scmp.lt.s32.totalorder %s1438_s7, %s1233_s0 }
 0x12f   :  { %p932_p5 = scmp.ne.s32.totalorder %s1438_s7, %s931_s14  ;;  %p937_p7 = scmp.lt.s32.totalorder %s1295_s15, %s931_s14 }
 0x131   :  { %p938_p8 = por %p937_p7, %p936_p6 }
 0x133   :  { %p939_p9 = pnand %p938_p8, %p932_p5 }
 0x135   :  { %942 = shalt.err (!%p939_p9)  }
 0x136   :  { %250 = dma.hbm_to_vmem [thread:$0]  %s238_s8, 16, %s1438_s7, [#allocation5] }
 0x137   :  { %s559_s26 = sshll.u32 %s1436_s30, 4  ;;  %s560_s21 = sld [smem:[#allocation7 + $0x10]] }
 0x138   :  { %s254_s19 = scalar_lea.hbm %s1590_s1, %s559_s26 }
 0x139   :  { %s943_s18 = scalar_lea.hbm %s254_s19, 16  ;;  %p946_p11 = scmp.lt.s32.totalorder %s254_s19, %s1590_s1 }
 0x13a   :  { %p944_p10 = scmp.ne.s32.totalorder %s254_s19, %s943_s18  ;;  %p947_p12 = scmp.lt.s32.totalorder %s1242_s9, %s943_s18 }
 0x13c   :  { %p948_p13 = por %p947_p12, %p946_p11 }
 0x13e   :  { %p949_p0 = pnand %p948_p13, %p944_p10 }
 0x140   :  { %952 = shalt.err (!%p949_p0)  }
 0x141   :  { %s953_s7 = scalar_lea.vmem %s1452_s25, 16  ;;  %p958_p2 = scmp.lt.s32.totalorder %s1452_s25, %s1225_s20 }
 0x142   :  { %p954_p1 = scmp.ne.s32.totalorder %s1452_s25, %s953_s7  ;;  %p959_p3 = scmp.lt.s32.totalorder %s1251_s13, %s953_s7 }
 0x144   :  { %p960_p4 = por %p959_p3, %p958_p2 }
 0x146   :  { %p961_p5 = pnand %p960_p4, %p954_p1 }
 0x148   :  { %964 = shalt.err (!%p961_p5)  }
 0x149   :  { %266 = dma.hbm_to_vmem [thread:$0]  %s254_s19, 16, %s1452_s25, [#allocation5] }
 0x14a   :  { %s1184_s30 = smov [#allocation3 + $0x5]   ;;  %s562_s6 = sld [smem:[#allocation7 + $0x11]] }
 0x14b   :  { %s279_s16 = sshll.u32 %s1184_s30, 4  ;;  %s1185_s8 = smov [#allocation4 + $0x5]   ;;  %s280_s16 = int_to_ptr.vmem [resolvable:$true] %s279_s16 }
 0x14c   :  { %s295_s5 = sshll.u32 %s1185_s8, 4  ;;  %s1478_s10 = sld [smem:[#allocation7 + $0x12]]  ;;  %s1480_s5 = int_to_ptr.vmem [resolvable:$true] %s295_s5 }
 0x14d   :  { %s561_s12 = sshll.u32 %s560_s21, 4 }
 0x14e   :  { %s270_s29 = scalar_lea.hbm %s1591_s2, %s561_s12 }
 0x14f   :  { %s965_s24 = scalar_lea.hbm %s270_s29, 16  ;;  %p968_p7 = scmp.lt.s32.totalorder %s270_s29, %s1591_s2 }
 0x150   :  { %p966_p6 = scmp.ne.s32.totalorder %s270_s29, %s965_s24  ;;  %p969_p8 = scmp.lt.s32.totalorder %s1264_s22, %s965_s24 }
 0x152   :  { %p970_p9 = por %p969_p8, %p968_p7 }
 0x154   :  { %p971_p10 = pnand %p970_p9, %p966_p6 }
 0x156   :  { %974 = shalt.err (!%p971_p10)  }
 0x157   :  { %s975_s25 = scalar_lea.vmem %s280_s16, 16  ;;  %p980_p12 = scmp.lt.s32.totalorder %s280_s16, %s1229_s23 }
 0x158   :  { %p976_p11 = scmp.ne.s32.totalorder %s280_s16, %s975_s25  ;;  %p981_p13 = scmp.lt.s32.totalorder %s1273_s28, %s975_s25 }
 0x15a   :  { %p982_p0 = por %p981_p13, %p980_p12 }
 0x15c   :  { %p983_p1 = pnand %p982_p0, %p976_p11 }
 0x15e   :  { %986 = shalt.err (!%p983_p1)  }
 0x15f   :  { %282 = dma.hbm_to_vmem [thread:$0]  %s270_s29, 16, %s280_s16, [#allocation5] }
 0x160   :  { %s563_s21 = sshll.u32 %s562_s6, 4  ;;  %s1186_s19 = smov [#allocation2 + $0x6]  }
 0x161   :  { %s311_s17 = sshll.u32 %s1186_s19, 4  ;;  %s286_s8 = scalar_lea.hbm %s1592_s3, %s563_s21  ;;  %s1494_s17 = int_to_ptr.vmem [resolvable:$true] %s311_s17 }
 0x162   :  { %s987_s12 = scalar_lea.hbm %s286_s8, 16  ;;  %p990_p3 = scmp.lt.s32.totalorder %s286_s8, %s1592_s3 }
 0x163   :  { %p988_p2 = scmp.ne.s32.totalorder %s286_s8, %s987_s12  ;;  %p991_p4 = scmp.lt.s32.totalorder %s1286_s11, %s987_s12 }
 0x165   :  { %p992_p5 = por %p991_p4, %p990_p3 }
 0x167   :  { %p993_p6 = pnand %p992_p5, %p988_p2 }
 0x169   :  { %996 = shalt.err (!%p993_p6)  }
 0x16a   :  { %s997_s16 = scalar_lea.vmem %s1480_s5, 16  ;;  %p1002_p8 = scmp.lt.s32.totalorder %s1480_s5, %s1233_s0 }
 0x16b   :  { %p998_p7 = scmp.ne.s32.totalorder %s1480_s5, %s997_s16  ;;  %p1003_p9 = scmp.lt.s32.totalorder %s1295_s15, %s997_s16 }
 0x16d   :  { %p1004_p10 = por %p1003_p9, %p1002_p8 }
 0x16f   :  { %p1005_p11 = pnand %p1004_p10, %p998_p7 }
 0x171   :  { %1008 = shalt.err (!%p1005_p11)  }
 0x172   :  { %298 = dma.hbm_to_vmem [thread:$0]  %s286_s8, 16, %s1480_s5, [#allocation5] }
 0x173   :  { %s565_s6 = sshll.u32 %s1478_s10, 4  ;;  %s566_s29 = sld [smem:[#allocation7 + $0x13]] }
 0x174   :  { %s302_s27 = scalar_lea.hbm %s1590_s1, %s565_s6 }
 0x175   :  { %s1009_s25 = scalar_lea.hbm %s302_s27, 16  ;;  %p1012_p13 = scmp.lt.s32.totalorder %s302_s27, %s1590_s1 }
 0x176   :  { %p1010_p12 = scmp.ne.s32.totalorder %s302_s27, %s1009_s25  ;;  %p1013_p0 = scmp.lt.s32.totalorder %s1242_s9, %s1009_s25 }
 0x178   :  { %p1014_p1 = por %p1013_p0, %p1012_p13 }
 0x17a   :  { %p1015_p2 = pnand %p1014_p1, %p1010_p12 }
 0x17c   :  { %1018 = shalt.err (!%p1015_p2)  }
 0x17d   :  { %s1019_s5 = scalar_lea.vmem %s1494_s17, 16  ;;  %p1024_p4 = scmp.lt.s32.totalorder %s1494_s17, %s1225_s20 }
 0x17e   :  { %p1020_p3 = scmp.ne.s32.totalorder %s1494_s17, %s1019_s5  ;;  %p1025_p5 = scmp.lt.s32.totalorder %s1251_s13, %s1019_s5 }
 0x180   :  { %p1026_p6 = por %p1025_p5, %p1024_p4 }
 0x182   :  { %p1027_p7 = pnand %p1026_p6, %p1020_p3 }
 0x184   :  { %1030 = shalt.err (!%p1027_p7)  }
 0x185   :  { %314 = dma.hbm_to_vmem [thread:$0]  %s302_s27, 16, %s1494_s17, [#allocation5] }
 0x186   :  { %s1187_s10 = smov [#allocation3 + $0x6]   ;;  %s568_s30 = sld [smem:[#allocation7 + $0x14]] }
 0x187   :  { %s327_s7 = sshll.u32 %s1187_s10, 4  ;;  %s1188_s8 = smov [#allocation4 + $0x6]   ;;  %s328_s7 = int_to_ptr.vmem [resolvable:$true] %s327_s7 }
 0x188   :  { %s343_s12 = sshll.u32 %s1188_s8, 4  ;;  %s1520_s14 = sld [smem:[#allocation7 + $0x15]]  ;;  %s1522_s12 = int_to_ptr.vmem [resolvable:$true] %s343_s12 }
 0x189   :  { %s567_s26 = sshll.u32 %s566_s29, 4 }
 0x18a   :  { %s318_s24 = scalar_lea.hbm %s1591_s2, %s567_s26 }
 0x18b   :  { %s1031_s18 = scalar_lea.hbm %s318_s24, 16  ;;  %p1034_p9 = scmp.lt.s32.totalorder %s318_s24, %s1591_s2 }
 0x18c   :  { %p1032_p8 = scmp.ne.s32.totalorder %s318_s24, %s1031_s18  ;;  %p1035_p10 = scmp.lt.s32.totalorder %s1264_s22, %s1031_s18 }
 0x18e   :  { %p1036_p11 = por %p1035_p10, %p1034_p9 }
 0x190   :  { %p1037_p12 = pnand %p1036_p11, %p1032_p8 }
 0x192   :  { %1040 = shalt.err (!%p1037_p12)  }
 0x193   :  { %s1041_s17 = scalar_lea.vmem %s328_s7, 16  ;;  %p1046_p0 = scmp.lt.s32.totalorder %s328_s7, %s1229_s23 }
 0x194   :  { %p1042_p13 = scmp.ne.s32.totalorder %s328_s7, %s1041_s17  ;;  %p1047_p1 = scmp.lt.s32.totalorder %s1273_s28, %s1041_s17 }
 0x196   :  { %p1048_p2 = por %p1047_p1, %p1046_p0 }
 0x198   :  { %p1049_p3 = pnand %p1048_p2, %p1042_p13 }
 0x19a   :  { %1052 = shalt.err (!%p1049_p3)  }
 0x19b   :  { %330 = dma.hbm_to_vmem [thread:$0]  %s318_s24, 16, %s328_s7, [#allocation5] }
 0x19c   :  { %s569_s29 = sshll.u32 %s568_s30, 4  ;;  %s1189_s27 = smov [#allocation2 + $0x7]  }
 0x19d   :  { %s359_s19 = sshll.u32 %s1189_s27, 4  ;;  %s334_s8 = scalar_lea.hbm %s1592_s3, %s569_s29  ;;  %s1536_s19 = int_to_ptr.vmem [resolvable:$true] %s359_s19 }
 0x19e   :  { %s1053_s26 = scalar_lea.hbm %s334_s8, 16  ;;  %p1056_p5 = scmp.lt.s32.totalorder %s334_s8, %s1592_s3 }
 0x19f   :  { %p1054_p4 = scmp.ne.s32.totalorder %s334_s8, %s1053_s26  ;;  %p1057_p6 = scmp.lt.s32.totalorder %s1286_s11, %s1053_s26 }
 0x1a1   :  { %p1058_p7 = por %p1057_p6, %p1056_p5 }
 0x1a3   :  { %p1059_p8 = pnand %p1058_p7, %p1054_p4 }
 0x1a5   :  { %1062 = shalt.err (!%p1059_p8)  }
 0x1a6   :  { %s1063_s7 = scalar_lea.vmem %s1522_s12, 16  ;;  %p1068_p10 = scmp.lt.s32.totalorder %s1522_s12, %s1233_s0 }
 0x1a7   :  { %p1064_p9 = scmp.ne.s32.totalorder %s1522_s12, %s1063_s7  ;;  %p1069_p11 = scmp.lt.s32.totalorder %s1295_s15, %s1063_s7 }
 0x1a9   :  { %p1070_p12 = por %p1069_p11, %p1068_p10 }
 0x1ab   :  { %p1071_p13 = pnand %p1070_p12, %p1064_p9 }
 0x1ad   :  { %1074 = shalt.err (!%p1071_p13)  }
 0x1ae   :  { %346 = dma.hbm_to_vmem [thread:$0]  %s334_s8, 16, %s1522_s12, [#allocation5] }
 0x1af   :  { %s571_s30 = sshll.u32 %s1520_s14, 4  ;;  %s572_s24 = sld [smem:[#allocation7 + $0x16]] }
 0x1b0   :  { %s350_s21 = scalar_lea.hbm %s1590_s1, %s571_s30 }
 0x1b1   :  { %s1075_s17 = scalar_lea.hbm %s350_s21, 16  ;;  %p1078_p1 = scmp.lt.s32.totalorder %s350_s21, %s1590_s1 }
 0x1b2   :  { %p1076_p0 = scmp.ne.s32.totalorder %s350_s21, %s1075_s17  ;;  %p1079_p2 = scmp.lt.s32.totalorder %s1242_s9, %s1075_s17 }
 0x1b4   :  { %p1080_p3 = por %p1079_p2, %p1078_p1 }
 0x1b6   :  { %p1081_p4 = pnand %p1080_p3, %p1076_p0 }
 0x1b8   :  { %1084 = shalt.err (!%p1081_p4)  }
 0x1b9   :  { %s1085_s12 = scalar_lea.vmem %s1536_s19, 16  ;;  %p1090_p6 = scmp.lt.s32.totalorder %s1536_s19, %s1225_s20 }
 0x1ba   :  { %p1086_p5 = scmp.ne.s32.totalorder %s1536_s19, %s1085_s12  ;;  %p1091_p7 = scmp.lt.s32.totalorder %s1251_s13, %s1085_s12 }
 0x1bc   :  { %p1092_p8 = por %p1091_p7, %p1090_p6 }
 0x1be   :  { %p1093_p9 = pnand %p1092_p8, %p1086_p5 }
 0x1c0   :  { %1096 = shalt.err (!%p1093_p9)  }
 0x1c1   :  { %362 = dma.hbm_to_vmem [thread:$0]  %s350_s21, 16, %s1536_s19, [#allocation5] }
 0x1c2   :  { %s1190_s1 = smov [#allocation3 + $0x7]   ;;  %s574_s14 = sld [smem:[#allocation7 + $0x17]] }
 0x1c3   :  { %s375_s9 = sshll.u32 %s1190_s1, 4  ;;  %s1191_s5 = smov [#allocation4 + $0x7]   ;;  %s376_s9 = int_to_ptr.vmem [resolvable:$true] %s375_s9 }
 0x1c4   :  { %s391_s10 = sshll.u32 %s1191_s5, 4  ;;  %s573_s8 = sshll.u32 %s572_s24, 4  ;;  %s1565_s10 = int_to_ptr.vmem [resolvable:$true] %s391_s10 }
 0x1c5   :  { %s366_s6 = scalar_lea.hbm %s1591_s2, %s573_s8 }
 0x1c6   :  { %s1097_s20 = scalar_lea.hbm %s366_s6, 16  ;;  %p1100_p11 = scmp.lt.s32.totalorder %s366_s6, %s1591_s2 }
 0x1c7   :  { %p1098_p10 = scmp.ne.s32.totalorder %s366_s6, %s1097_s20  ;;  %p1101_p12 = scmp.lt.s32.totalorder %s1264_s22, %s1097_s20 }
 0x1c9   :  { %p1102_p13 = por %p1101_p12, %p1100_p11 }
 0x1cb   :  { %p1103_p0 = pnand %p1102_p13, %p1098_p10 }
 0x1cd   :  { %1106 = shalt.err (!%p1103_p0)  }
 0x1ce   :  { %s1107_s19 = scalar_lea.vmem %s376_s9, 16  ;;  %p1112_p2 = scmp.lt.s32.totalorder %s376_s9, %s1229_s23 }
 0x1cf   :  { %p1108_p1 = scmp.ne.s32.totalorder %s376_s9, %s1107_s19  ;;  %p1113_p3 = scmp.lt.s32.totalorder %s1273_s28, %s1107_s19 }
 0x1d1   :  { %p1114_p4 = por %p1113_p3, %p1112_p2 }
 0x1d3   :  { %p1115_p5 = pnand %p1114_p4, %p1108_p1 }
 0x1d5   :  { %1118 = shalt.err (!%p1115_p5)  }
 0x1d6   :  { %378 = dma.hbm_to_vmem [thread:$0]  %s366_s6, 16, %s376_s9, [#allocation5] }
 0x1d7   :  { %s575_s30 = sshll.u32 %s574_s14, 4 }
 0x1d8   :  { %s382_s2 = scalar_lea.hbm %s1592_s3, %s575_s30 }
 0x1d9   :  { %s1119_s22 = scalar_lea.hbm %s382_s2, 16  ;;  %p1122_p7 = scmp.lt.s32.totalorder %s382_s2, %s1592_s3 }
 0x1da   :  { %p1120_p6 = scmp.ne.s32.totalorder %s382_s2, %s1119_s22  ;;  %p1123_p8 = scmp.lt.s32.totalorder %s1286_s11, %s1119_s22 }
 0x1dc   :  { %p1124_p9 = por %p1123_p8, %p1122_p7 }
 0x1de   :  { %p1125_p10 = pnand %p1124_p9, %p1120_p6 }
 0x1e0   :  { %1128 = shalt.err (!%p1125_p10)  }
 0x1e1   :  { %s1129_s23 = scalar_lea.vmem %s1565_s10, 16  ;;  %p1134_p12 = scmp.lt.s32.totalorder %s1565_s10, %s1233_s0 }
 0x1e2   :  { %p1130_p11 = scmp.ne.s32.totalorder %s1565_s10, %s1129_s23  ;;  %p1135_p13 = scmp.lt.s32.totalorder %s1295_s15, %s1129_s23 }
 0x1e4   :  { %p1136_p0 = por %p1135_p13, %p1134_p12 }
 0x1e6   :  { %p1137_p1 = pnand %p1136_p0, %p1130_p11 }
 0x1e8   :  { %1140 = shalt.err (!%p1137_p1)  }
 0x1e9   :  { %394 = dma.hbm_to_vmem [thread:$0]  %s382_s2, 16, %s1565_s10, [#allocation5] }
 0x1ea   :  { %1163 = dma.done.wait [#allocation5], 384 }
 0x1eb   :  { %1164 = vsyncadd [#allocation5], 4294966912  ;;  %vm445_vm0 = vcmask 261120   ;;  %v447_v0 = vld [vmem:[#allocation3] sm:$0xff]  ;;  %v444_v1 = vld [vmem:[#allocation2] sm:$0xff]  ;;  %s1192_s3 = smov 32  }
 0x1ec   :  { %449 = vrot.lane.b32.xlu0 %v447_v0, %s1192_s3  ;;  %446 = vst.msk [vmem:[#allocation8] sm:$0xff] %vm445_vm0, %v444_v1  ;;  %v454_v2 = vld [vmem:[#allocation4] sm:$0xff]  ;;  %s1193_s28 = smov 64   ;;  %vm452_vm1 = vcmask 523520   ;;  %s1194_s0 = smov [#allocation8]   ;;  %vm459_vm2 = vcmask 785920  }
 0x1ed   :  { %s467_s11 = sshll.u32 %s1194_s0, 4  ;;  %s468_s11 = int_to_ptr.vmem [resolvable:$true] %s467_s11 }
 0x1ee   :  { %s1141_s15 = scalar_lea.vmem %s468_s11, 128  ;;  %p1146_p3 = scmp.lt.s32.totalorder %s468_s11, %s468_s11 }
 0x1ef   :  { %p1142_p2 = scmp.ne.s32.totalorder %s468_s11, %s1141_s15  ;;  %p1147_p4 = scmp.lt.s32.totalorder %s1141_s15, %s1141_s15 }
 0x1f0   :  { %456 = vrot.lane.b32.xlu0 %v454_v2, %s1193_s28 }
 0x1f1   :  { %p1148_p5 = por %p1147_p4, %p1146_p3 }
 0x1f3   :  { %p1149_p6 = pnand %p1148_p5, %p1142_p2 }
 0x25e   :  { %v450_v3 = vpop.permute.xlu0 %449 }
 0x25f   :  { %453 = vst.msk [vmem:[#allocation8] sm:$0xff] %vm452_vm1, %v450_v3 }
 0x262   :  { %v457_v4 = vpop.permute.xlu0 %456 }
 0x263   :  { %460 = vst.msk [vmem:[#allocation8] sm:$0xff] %vm459_vm2, %v457_v4 }
 0x264   :  { %1152 = shalt.err (!%p1149_p6)
}
 0x265   :  { %470 = dma.vmem_to_hbm [thread:$0]  %s468_s11, 128, %s1593_s4, [#allocation9]  }
 0x266   :  { %1165 = dma.done.wait [#allocation9], 128  }
 0x267   :  { %1166 = vsyncadd [#allocation9], 4294967168 }
 0x268   :  { %474 = vsyncpa [#allocation9], 1 }
 0x269   :  { %475 = vsyncmov [#allocation5] }
 0x26c   :  { %s476_s27 = vpop.sfrf %475 }
 0x26d   :  { %p576_p7 = scmp.ne.s32.totalorder %s476_s27, 0 }
 0x26f   :  { %480 = shalt.err (%p576_p7)  }

</bundles_post_ra>
